<compile_context>
chip_gen: v6e
topology: v6e:2x2x1
jax: 0.10.0
libtpu: 0.0.40
codegen_flags: <defaults>
</compile_context>

<pallas_src>
import math
from functools import partial

import jax
import jax.numpy as jnp
from jax.experimental import pallas as pl
from jax.experimental.pallas import tpu as pltpu

NEG_INF = -1e30  # large negative for masking (softmax subtracts row max -> stable)

# FFN weights are kept fully resident in VMEM only if (w1 + w2) * 2 (double buffer)
# stays under this budget; otherwise fall back to two tiled linear kernels.
_FFN_FUSE_BYTES = 20 * 1024 * 1024


def _pick_tile(dim, target, align):
    """Largest tile <= target that divides dim and is a multiple of align; else the full dim."""
    if dim <= target:
        return dim
    t = (target // align) * align
    while t >= align:
        if dim % t == 0:
            return t
        t -= align
    return dim


# ----------------------------- tiled linear kernel -----------------------------

def _linear_kernel(x_ref, w_ref, b_ref, o_ref, acc_ref, *, act):
    @pl.when(pl.program_id(2) == 0)
    def _():
        acc_ref[...] = jnp.zeros_like(acc_ref)

    acc_ref[...] += jnp.dot(x_ref[...], w_ref[...], preferred_element_type=jnp.float32)

    @pl.when(pl.program_id(2) == pl.num_programs(2) - 1)
    def _():
        y = acc_ref[...] + b_ref[...].astype(jnp.float32)
        if act == "relu":
            y = jnp.maximum(y, 0.0)
        o_ref[...] = y.astype(o_ref.dtype)


def linear(x, w_t, b, act=None):
    """y = x @ w_t + b.  x: (..., K); w_t: (K, N) pre-transposed; b: (1, N)."""
    K = x.shape[-1]
    N = w_t.shape[1]
    lead = x.shape[:-1]
    x2 = x.reshape(-1, K)
    M = x2.shape[0]

    TM = _pick_tile(M, 256, 8)
    TN = _pick_tile(N, 256, 128)
    TK = _pick_tile(K, 512, 128)
    gm, gn, gk = M // TM, N // TN, K // TK

    y = pl.pallas_call(
        partial(_linear_kernel, act=act),
        out_shape=jax.ShapeDtypeStruct((M, N), x.dtype),
        grid=(gm, gn, gk),
        in_specs=[pl.BlockSpec((TM, TK), lambda i, j, k: (i, k)),
                  pl.BlockSpec((TK, TN), lambda i, j, k: (k, j)),
                  pl.BlockSpec((1, TN), lambda i, j, k: (0, j))],
        out_specs=pl.BlockSpec((TM, TN), lambda i, j, k: (i, j)),
        scratch_shapes=[pltpu.VMEM((TM, TN), jnp.float32)],
        compiler_params=pltpu.CompilerParams(
            dimension_semantics=("parallel", "parallel", "arbitrary")),
    )(x2, w_t, b)
    return y.reshape(*lead, N)


# ------------------------ fused residual + LayerNorm kernel ------------------------

def _add_ln_kernel(x_ref, r_ref, g_ref, b_ref, o_ref, *, eps):
    x = x_ref[...].astype(jnp.float32) + r_ref[...].astype(jnp.float32)
    mu = jnp.mean(x, axis=-1, keepdims=True)
    xc = x - mu
    var = jnp.mean(xc * xc, axis=-1, keepdims=True)
    y = xc * jax.lax.rsqrt(var + eps)
    o_ref[...] = (y * g_ref[...] + b_ref[...]).astype(o_ref.dtype)


def add_layer_norm(x, r, g, b, eps=1e-5):
    """LayerNorm(x + r) with gamma g (1, D), beta b (1, D). Residual add fused in-kernel."""
    D = x.shape[-1]
    lead = x.shape[:-1]
    x2 = x.reshape(-1, D)
    r2 = r.reshape(-1, D)
    M = x2.shape[0]
    TM = _pick_tile(M, 512, 8)
    y = pl.pallas_call(
        partial(_add_ln_kernel, eps=eps),
        out_shape=jax.ShapeDtypeStruct((M, D), x.dtype),
        grid=(M // TM,),
        in_specs=[pl.BlockSpec((TM, D), lambda i: (i, 0)),
                  pl.BlockSpec((TM, D), lambda i: (i, 0)),
                  pl.BlockSpec((1, D), lambda i: (0, 0)),
                  pl.BlockSpec((1, D), lambda i: (0, 0))],
        out_specs=pl.BlockSpec((TM, D), lambda i: (i, 0)),
        compiler_params=pltpu.CompilerParams(dimension_semantics=("parallel",)),
    )(x2, r2, g, b)
    return y.reshape(*lead, D)


# ------------------------------- fused FFN kernel -------------------------------

def _ffn_kernel(x_ref, w1_ref, b1_ref, w2_ref, b2_ref, o_ref):
    h = jnp.dot(x_ref[...], w1_ref[...], preferred_element_type=jnp.float32)
    h = jnp.maximum(h + b1_ref[...].astype(jnp.float32), 0.0)
    y = jnp.dot(h, w2_ref[...], preferred_element_type=jnp.float32)
    o_ref[...] = (y + b2_ref[...].astype(jnp.float32)).astype(o_ref.dtype)


def ffn(x, w1_t, b1, w2_t, b2):
    """relu(x @ w1_t + b1) @ w2_t + b2 with the ff intermediate kept in VMEM."""
    D = x.shape[-1]
    FF = w1_t.shape[1]
    lead = x.shape[:-1]
    x2 = x.reshape(-1, D)
    M = x2.shape[0]

    weight_bytes = (D * FF + FF * D) * x.dtype.itemsize * 2  # double-buffered estimate
    if weight_bytes > _FFN_FUSE_BYTES:
        # Weights too large to keep resident: fall back to two tiled matmul kernels.
        h = linear(x, w1_t, b1, act="relu")
        return linear(h, w2_t, b2)

    TM = _pick_tile(M, 256, 8)
    y = pl.pallas_call(
        _ffn_kernel,
        out_shape=jax.ShapeDtypeStruct((M, D), x.dtype),
        grid=(M // TM,),
        in_specs=[pl.BlockSpec((TM, D), lambda i: (i, 0)),
                  pl.BlockSpec((D, FF), lambda i: (0, 0)),
                  pl.BlockSpec((1, FF), lambda i: (0, 0)),
                  pl.BlockSpec((FF, D), lambda i: (0, 0)),
                  pl.BlockSpec((1, D), lambda i: (0, 0))],
        out_specs=pl.BlockSpec((TM, D), lambda i: (i, 0)),
        compiler_params=pltpu.CompilerParams(dimension_semantics=("parallel",)),
    )(x2, w1_t, b1, w2_t, b2)
    return y.reshape(*lead, D)


# --------------------------- fused multi-head attention ---------------------------
# Heads are split/merged inside the kernel; masks are generated in-kernel from a
# tiny (B, Sk) additive row + in-kernel iota (no (B*H, Sq, Sk) mask in HBM).
# TODO(synk): switch to an online-softmax (flash) formulation tiled over Sk for
# long sequences (current kernel materializes the full per-head (Sq, Sk) scores).

def _attn_heads(q, k, v, mask, n_heads, dh):
    scale = 1.0 / math.sqrt(dh)
    outs = []
    for h in range(n_heads):
        qh = q[:, h * dh:(h + 1) * dh]
        kh = k[:, h * dh:(h + 1) * dh]
        vh = v[:, h * dh:(h + 1) * dh]
        s = jax.lax.dot_general(qh, kh, (((1,), (1,)), ((), ())),
                                preferred_element_type=jnp.float32)
        s = s * scale + mask
        s = s - jnp.max(s, axis=-1, keepdims=True)
        p = jnp.exp(s)
        p = p * pl.reciprocal(jnp.sum(p, axis=-1, keepdims=True), approx=True)
        outs.append(jnp.dot(p, vh, preferred_element_type=jnp.float32))
    return jnp.concatenate(outs, axis=-1)  # (Sq, D), lane-dense single store


def _self_attn_kernel(qkv_ref, kadd_ref, o_ref, *, n_heads, causal):
    b = pl.program_id(0)
    S = qkv_ref.shape[1]
    D = qkv_ref.shape[2] // 3
    dh = D // n_heads
    qkv = qkv_ref[0].astype(jnp.float32)          # (S, 3D) = [q | k | v]
    q, k, v = qkv[:, 0:D], qkv[:, D:2 * D], qkv[:, 2 * D:3 * D]
    mask = jnp.broadcast_to(kadd_ref[pl.ds(b, 1), :], (S, S))
    if causal:
        row = jax.lax.broadcasted_iota(jnp.int32, (S, S), 0)
        col = jax.lax.broadcasted_iota(jnp.int32, (S, S), 1)
        mask = jnp.where(col > row, NEG_INF, mask)
    o_ref[0] = _attn_heads(q, k, v, mask, n_heads, dh).astype(o_ref.dtype)


def _cross_attn_kernel(q_ref, kv_ref, kadd_ref, o_ref, *, n_heads):
    b = pl.program_id(0)
    Sq = q_ref.shape[1]
    D = q_ref.shape[2]
    Sk = kv_ref.shape[1]
    dh = D // n_heads
    q = q_ref[0].astype(jnp.float32)              # (Sq, D)
    kv = kv_ref[0].astype(jnp.float32)            # (Sk, 2D) = [k | v]
    k, v = kv[:, 0:D], kv[:, D:2 * D]
    mask = jnp.broadcast_to(kadd_ref[pl.ds(b, 1), :], (Sq, Sk))
    o_ref[0] = _attn_heads(q, k, v, mask, n_heads, dh).astype(o_ref.dtype)


def self_attention(qkv, kadd, n_heads, causal):
    """qkv: (B, S, 3D) packed [q|k|v]; kadd: (B, S) additive key-padding row (0 / NEG_INF)."""
    B, S, D3 = qkv.shape
    D = D3 // 3
    return pl.pallas_call(
        partial(_self_attn_kernel, n_heads=n_heads, causal=causal),
        out_shape=jax.ShapeDtypeStruct((B, S, D), qkv.dtype),
        grid=(B,),
        in_specs=[pl.BlockSpec((1, S, D3), lambda b: (b, 0, 0)),
                  pl.BlockSpec((B, S), lambda b: (0, 0))],
        out_specs=pl.BlockSpec((1, S, D), lambda b: (b, 0, 0)),
        compiler_params=pltpu.CompilerParams(dimension_semantics=("parallel",)),
    )(qkv, kadd)


def cross_attention(q, kv, kadd, n_heads):
    """q: (B, Sq, D); kv: (B, Sk, 2D) packed [k|v]; kadd: (B, Sk) additive row."""
    B, Sq, D = q.shape
    Sk = kv.shape[1]
    return pl.pallas_call(
        partial(_cross_attn_kernel, n_heads=n_heads),
        out_shape=jax.ShapeDtypeStruct((B, Sq, D), q.dtype),
        grid=(B,),
        in_specs=[pl.BlockSpec((1, Sq, D), lambda b: (b, 0, 0)),
                  pl.BlockSpec((1, Sk, 2 * D), lambda b: (b, 0, 0)),
                  pl.BlockSpec((B, Sk), lambda b: (0, 0))],
        out_specs=pl.BlockSpec((1, Sq, D), lambda b: (b, 0, 0)),
        compiler_params=pltpu.CompilerParams(dimension_semantics=("parallel",)),
    )(q, kv, kadd)


# --------------------------- model building blocks ---------------------------

def mha_self(x, p, n_heads, kadd, causal):
    qkv = linear(x, p["w_qkv"], p["b_qkv"])              # (B, S, 3D) packed
    o = self_attention(qkv, kadd, n_heads, causal)
    return linear(o, p["w_o"], p["b_o"])


def mha_cross(x, mem, p, n_heads, kadd):
    q = linear(x, p["w_q"], p["b_q"])                    # (B, Sq, D)
    kv = linear(mem, p["w_kv"], p["b_kv"])               # (B, Sk, 2D) packed
    o = cross_attention(q, kv, kadd, n_heads)
    return linear(o, p["w_o"], p["b_o"])


def encoder_layer(x, p, n_heads, kadd):
    # post-norm (PyTorch default norm_first=False), activation=relu
    a = mha_self(x, p["self_attn"], n_heads, kadd, causal=False)
    x = add_layer_norm(x, a, p["norm1_g"], p["norm1_b"])
    f = ffn(x, p["lin1_w"], p["lin1_b"], p["lin2_w"], p["lin2_b"])
    x = add_layer_norm(x, f, p["norm2_g"], p["norm2_b"])
    return x


def decoder_layer(x, mem, p, n_heads, tgt_kadd, mem_kadd):
    a = mha_self(x, p["self_attn"], n_heads, tgt_kadd, causal=True)
    x = add_layer_norm(x, a, p["norm1_g"], p["norm1_b"])
    a = mha_cross(x, mem, p["cross_attn"], n_heads, mem_kadd)
    x = add_layer_norm(x, a, p["norm2_g"], p["norm2_b"])
    f = ffn(x, p["lin1_w"], p["lin1_b"], p["lin2_w"], p["lin2_b"])
    x = add_layer_norm(x, f, p["norm3_g"], p["norm3_b"])
    return x


def positional_encoding(max_len, d_model):
    position = jnp.arange(max_len, dtype=jnp.float32)[:, None]
    div_term = jnp.exp(jnp.arange(0, d_model, 2, dtype=jnp.float32) * (-math.log(10000.0) / d_model))
    pe = jnp.zeros((max_len, d_model), jnp.float32)
    pe = pe.at[:, 0::2].set(jnp.sin(position * div_term))
    pe = pe.at[:, 1::2].set(jnp.cos(position * div_term))
    return pe


def transformer_autoencoder_forward(params, src, tgt, src_pad_mask, tgt_pad_mask, *, n_heads):
    """src/tgt: int32 (B, S) token ids; *_pad_mask: bool (B, S), True == padding."""
    B, Ssrc = src.shape
    T = tgt.shape[1]
    pe = params["pe"]

    # Tiny additive key-padding rows, computed once (masks proper are built in-kernel).
    src_kadd = jnp.where(src_pad_mask, NEG_INF, 0.0).astype(jnp.float32)   # (B, Ssrc)
    tgt_kadd = jnp.where(tgt_pad_mask, NEG_INF, 0.0).astype(jnp.float32)   # (B, T)

    # ------------------ Encoder ------------------
    x = jnp.take(params["enc_emb"], src, axis=0)       # embedding lookup (XLA glue)
    x = x + pe[:Ssrc][None, :, :]                       # PositionalEncoding (dropout = identity)
    for lp in params["enc_layers"]:
        x = encoder_layer(x, lp, n_heads, src_kadd)
    memory = x

    # ------------------ Decoder ------------------
    y = jnp.take(params["dec_emb"], tgt, axis=0)
    y = y + pe[:T][None, :, :]
    for lp in params["dec_layers"]:
        y = decoder_layer(y, memory, lp, n_heads, tgt_kadd, src_kadd)

    # ------------------ Output projection ------------------
    return linear(y, params["fc_out_w"], params["fc_out_b"])


# ------------------------------ parameter init ------------------------------
# Weights are stored pre-transposed (in, out) and biases as (1, out) so the
# forward path never transposes/reshapes parameters.

def _uniform(key, shape, fan_in):
    s = 1.0 / math.sqrt(fan_in)
    return jax.random.uniform(key, shape, jnp.float32, -s, s)


def _init_self_attn(key, d):
    k1, k2, k3, k4 = jax.random.split(key, 4)
    return {"w_qkv": _uniform(k1, (d, 3 * d), d), "b_qkv": _uniform(k2, (1, 3 * d), d),
            "w_o": _uniform(k3, (d, d), d), "b_o": _uniform(k4, (1, d), d)}


def _init_cross_attn(key, d):
    ks = jax.random.split(key, 6)
    return {"w_q": _uniform(ks[0], (d, d), d), "b_q": _uniform(ks[1], (1, d), d),
            "w_kv": _uniform(ks[2], (d, 2 * d), d), "b_kv": _uniform(ks[3], (1, 2 * d), d),
            "w_o": _uniform(ks[4], (d, d), d), "b_o": _uniform(ks[5], (1, d), d)}


def _init_ffn_norms(key, d, ff, n_norms):
    ks = jax.random.split(key, 4)
    p = {"lin1_w": _uniform(ks[0], (d, ff), d), "lin1_b": _uniform(ks[1], (1, ff), d),
         "lin2_w": _uniform(ks[2], (ff, d), ff), "lin2_b": _uniform(ks[3], (1, d), ff)}
    for i in range(1, n_norms + 1):
        p[f"norm{i}_g"] = jnp.ones((1, d), jnp.float32)
        p[f"norm{i}_b"] = jnp.zeros((1, d), jnp.float32)
    return p


def _init_enc_layer(key, d, ff):
    k1, k2 = jax.random.split(key)
    p = {"self_attn": _init_self_attn(k1, d)}
    p.update(_init_ffn_norms(k2, d, ff, 2))
    return p


def _init_dec_layer(key, d, ff):
    k1, k2, k3 = jax.random.split(key, 3)
    p = {"self_attn": _init_self_attn(k1, d), "cross_attn": _init_cross_attn(k2, d)}
    p.update(_init_ffn_norms(k3, d, ff, 3))
    return p


def init_params(key, num_emb, hid_dim, n_layers, n_heads, ff_dim, max_length):
    ks = jax.random.split(key, 4 + 2 * n_layers)
    return {
        "enc_emb": jax.random.normal(ks[0], (num_emb, hid_dim), jnp.float32),
        "dec_emb": jax.random.normal(ks[1], (num_emb, hid_dim), jnp.float32),
        "fc_out_w": _uniform(ks[2], (hid_dim, num_emb), hid_dim),
        "fc_out_b": _uniform(ks[3], (1, num_emb), hid_dim),
        "enc_layers": [_init_enc_layer(ks[4 + i], hid_dim, ff_dim) for i in range(n_layers)],
        "dec_layers": [_init_dec_layer(ks[4 + n_layers + i], hid_dim, ff_dim) for i in range(n_layers)],
        "pe": positional_encoding(max_length, hid_dim),
    }


# ----------------------------------- main -----------------------------------

if __name__ == "__main__":
    # small, forward-consistent config
    num_emb, hid_dim, n_layers, n_heads, ff_dim, dropout, max_length = 50, 32, 2, 4, 64, 0.1, 8
    B, S = 2, max_length   # tgt length must equal max_length (size of registered tgt_mask)

    params = init_params(jax.random.PRNGKey(0), num_emb, hid_dim, n_layers, n_heads, ff_dim, max_length)

    k1, k2 = jax.random.split(jax.random.PRNGKey(0))
    src = jax.random.randint(k1, (B, S), 0, num_emb, dtype=jnp.int32)
    tgt = jax.random.randint(k2, (B, S), 0, num_emb, dtype=jnp.int32)
    # True == padding (PyTorch key_padding_mask convention); keep early positions unpadded
    src_pad_mask = jnp.zeros((B, S), dtype=bool).at[1, -2:].set(True)
    tgt_pad_mask = jnp.zeros((B, S), dtype=bool).at[1, -1:].set(True)

    fwd = jax.jit(partial(transformer_autoencoder_forward, n_heads=n_heads))
    out = fwd(params, src, tgt, src_pad_mask, tgt_pad_mask)
    jax.block_until_ready(out)
    assert out.shape == (B, S, num_emb) and out.dtype == jnp.float32
    assert bool(jnp.all(jnp.isfinite(out)))
    print("KERNEL_OK")
</pallas_src>

<mosaic_0001>
module attributes {stable_mosaic.version = 11 : i64} {
  func.func @_linear_kernel(%arg0: i32, %arg1: i32, %arg2: i32, %arg3: memref<16x32xf32, #tpu.memory_space<vmem>>, %arg4: memref<32x96xf32, #tpu.memory_space<vmem>>, %arg5: memref<1x96xf32, #tpu.memory_space<vmem>>, %arg6: memref<16x96xf32, #tpu.memory_space<vmem>>, %arg7: memref<16x96xf32, #tpu.memory_space<vmem>>) attributes {dimension_semantics = [#tpu.dimension_semantics<parallel>, #tpu.dimension_semantics<parallel>, #tpu.dimension_semantics<arbitrary>], iteration_bounds = array<i64: 1, 1, 1>, scalar_prefetch = 0 : i64, scratch_operands = 1 : i64, tpu.core_type = #tpu.core_type<tc>, window_params = [{transform_indices = @transform_0, window_bounds = array<i64: 16, 32>}, {transform_indices = @transform_1, window_bounds = array<i64: 32, 96>}, {transform_indices = @transform_2, window_bounds = array<i64: 1, 96>}, {transform_indices = @transform_3, window_bounds = array<i64: 16, 96>}]} {
    %c0_i32 = arith.constant 0 : i32
    %0 = arith.cmpi eq, %arg2, %c0_i32 : i32
    %1 = arith.extui %0 : i1 to i32
    %c0_i32_0 = arith.constant 0 : i32
    %2 = arith.cmpi ne, %1, %c0_i32_0 : i32
    scf.if %2 {
      %cst_10 = arith.constant 0.000000e+00 : f32
      %12 = vector.broadcast %cst_10 : f32 to vector<16x96xf32>
      %c0_11 = arith.constant 0 : index
      %c0_12 = arith.constant 0 : index
      %13 = vector.load %arg7[%c0_11, %c0_12] : memref<16x96xf32, #tpu.memory_space<vmem>>, vector<16x96xf32>
      tpu.vector_store %arg7[%c0_11, %c0_12], %12 {strides = array<i32>} : memref<16x96xf32, #tpu.memory_space<vmem>>, vector<16x96xf32>,
    } else {
    }
    %c0 = arith.constant 0 : index
    %c0_1 = arith.constant 0 : index
    %3 = vector.load %arg7[%c0, %c0_1] : memref<16x96xf32, #tpu.memory_space<vmem>>, vector<16x96xf32>
    %c0_2 = arith.constant 0 : index
    %c0_3 = arith.constant 0 : index
    %4 = vector.load %arg3[%c0_2, %c0_3] : memref<16x32xf32, #tpu.memory_space<vmem>>, vector<16x32xf32>
    %c0_4 = arith.constant 0 : index
    %c0_5 = arith.constant 0 : index
    %5 = vector.load %arg4[%c0_4, %c0_5] : memref<32x96xf32, #tpu.memory_space<vmem>>, vector<32x96xf32>
    %cst = arith.constant dense<0.000000e+00> : vector<16x96xf32>
    %6 = tpu.matmul %4, %5, %cst {dimension_numbers = #tpu.dot_dimension_numbers<[1], [0], [0], [1], [0, 0, 1, 1], [], []>} : vector<16x32xf32>, vector<32x96xf32>, vector<16x96xf32> -> vector<16x96xf32>
    %7 = arith.addf %3, %6 : vector<16x96xf32>
    %c0_6 = arith.constant 0 : index
    %c0_7 = arith.constant 0 : index
    %8 = vector.load %arg7[%c0_6, %c0_7] : memref<16x96xf32, #tpu.memory_space<vmem>>, vector<16x96xf32>
    tpu.vector_store %arg7[%c0_6, %c0_7], %7 {strides = array<i32>} : memref<16x96xf32, #tpu.memory_space<vmem>>, vector<16x96xf32>,
    %c0_i32_8 = arith.constant 0 : i32
    %9 = arith.cmpi eq, %arg2, %c0_i32_8 : i32
    %10 = arith.extui %9 : i1 to i32
    %c0_i32_9 = arith.constant 0 : i32
    %11 = arith.cmpi ne, %10, %c0_i32_9 : i32
    scf.if %11 {
      %c0_10 = arith.constant 0 : index
      %c0_11 = arith.constant 0 : index
      %12 = vector.load %arg7[%c0_10, %c0_11] : memref<16x96xf32, #tpu.memory_space<vmem>>, vector<16x96xf32>
      %c0_12 = arith.constant 0 : index
      %c0_13 = arith.constant 0 : index
      %13 = vector.load %arg5[%c0_12, %c0_13] : memref<1x96xf32, #tpu.memory_space<vmem>>, vector<1x96xf32>
      %14 = vector.broadcast %13 : vector<1x96xf32> to vector<16x96xf32>
      %15 = arith.addf %12, %14 : vector<16x96xf32>
      %c0_14 = arith.constant 0 : index
      %c0_15 = arith.constant 0 : index
      %16 = vector.load %arg6[%c0_14, %c0_15] : memref<16x96xf32, #tpu.memory_space<vmem>>, vector<16x96xf32>
      tpu.vector_store %arg6[%c0_14, %c0_15], %15 {strides = array<i32>} : memref<16x96xf32, #tpu.memory_space<vmem>>, vector<16x96xf32>,
    } else {
    }
    return
  }
  func.func @transform_0(%arg0: i32, %arg1: i32, %arg2: i32) -> (i32, i32) {
    %c0_i32 = arith.constant 0 : i32
    return %arg0, %arg2 : i32, i32
  }
  func.func @transform_1(%arg0: i32, %arg1: i32, %arg2: i32) -> (i32, i32) {
    %c0_i32 = arith.constant 0 : i32
    return %arg2, %arg1 : i32, i32
  }
  func.func @transform_2(%arg0: i32, %arg1: i32, %arg2: i32) -> (i32, i32) {
    %c0_i32 = arith.constant 0 : i32
    %c0_i32_0 = arith.constant 0 : i32
    return %c0_i32, %arg1 : i32, i32
  }
  func.func @transform_3(%arg0: i32, %arg1: i32, %arg2: i32) -> (i32, i32) {
    %c0_i32 = arith.constant 0 : i32
    return %arg0, %arg1 : i32, i32
  }
}

module attributes {stable_mosaic.version = 11 : i64} {
  func.func @_linear_kernel(%arg0: i32, %arg1: i32, %arg2: i32, %arg3: memref<16x32xf32, #tpu.memory_space<vmem>>, %arg4: memref<32x32xf32, #tpu.memory_space<vmem>>, %arg5: memref<1x32xf32, #tpu.memory_space<vmem>>, %arg6: memref<16x32xf32, #tpu.memory_space<vmem>>, %arg7: memref<16x32xf32, #tpu.memory_space<vmem>>) attributes {dimension_semantics = [#tpu.dimension_semantics<parallel>, #tpu.dimension_semantics<parallel>, #tpu.dimension_semantics<arbitrary>], iteration_bounds = array<i64: 1, 1, 1>, scalar_prefetch = 0 : i64, scratch_operands = 1 : i64, tpu.core_type = #tpu.core_type<tc>, window_params = [{transform_indices = @transform_0, window_bounds = array<i64: 16, 32>}, {transform_indices = @transform_1, window_bounds = array<i64: 32, 32>}, {transform_indices = @transform_2, window_bounds = array<i64: 1, 32>}, {transform_indices = @transform_3, window_bounds = array<i64: 16, 32>}]} {
    %c0_i32 = arith.constant 0 : i32
    %0 = arith.cmpi eq, %arg2, %c0_i32 : i32
    %1 = arith.extui %0 : i1 to i32
    %c0_i32_0 = arith.constant 0 : i32
    %2 = arith.cmpi ne, %1, %c0_i32_0 : i32
    scf.if %2 {
      %cst_10 = arith.constant 0.000000e+00 : f32
      %12 = vector.broadcast %cst_10 : f32 to vector<16x32xf32>
      %c0_11 = arith.constant 0 : index
      %c0_12 = arith.constant 0 : index
      %13 = vector.load %arg7[%c0_11, %c0_12] : memref<16x32xf32, #tpu.memory_space<vmem>>, vector<16x32xf32>
      tpu.vector_store %arg7[%c0_11, %c0_12], %12 {strides = array<i32>} : memref<16x32xf32, #tpu.memory_space<vmem>>, vector<16x32xf32>,
    } else {
    }
    %c0 = arith.constant 0 : index
    %c0_1 = arith.constant 0 : index
    %3 = vector.load %arg7[%c0, %c0_1] : memref<16x32xf32, #tpu.memory_space<vmem>>, vector<16x32xf32>
    %c0_2 = arith.constant 0 : index
    %c0_3 = arith.constant 0 : index
    %4 = vector.load %arg3[%c0_2, %c0_3] : memref<16x32xf32, #tpu.memory_space<vmem>>, vector<16x32xf32>
    %c0_4 = arith.constant 0 : index
    %c0_5 = arith.constant 0 : index
    %5 = vector.load %arg4[%c0_4, %c0_5] : memref<32x32xf32, #tpu.memory_space<vmem>>, vector<32x32xf32>
    %cst = arith.constant dense<0.000000e+00> : vector<16x32xf32>
    %6 = tpu.matmul %4, %5, %cst {dimension_numbers = #tpu.dot_dimension_numbers<[1], [0], [0], [1], [0, 0, 1, 1], [], []>} : vector<16x32xf32>, vector<32x32xf32>, vector<16x32xf32> -> vector<16x32xf32>
    %7 = arith.addf %3, %6 : vector<16x32xf32>
    %c0_6 = arith.constant 0 : index
    %c0_7 = arith.constant 0 : index
    %8 = vector.load %arg7[%c0_6, %c0_7] : memref<16x32xf32, #tpu.memory_space<vmem>>, vector<16x32xf32>
    tpu.vector_store %arg7[%c0_6, %c0_7], %7 {strides = array<i32>} : memref<16x32xf32, #tpu.memory_space<vmem>>, vector<16x32xf32>,
    %c0_i32_8 = arith.constant 0 : i32
    %9 = arith.cmpi eq, %arg2, %c0_i32_8 : i32
    %10 = arith.extui %9 : i1 to i32
    %c0_i32_9 = arith.constant 0 : i32
    %11 = arith.cmpi ne, %10, %c0_i32_9 : i32
    scf.if %11 {
      %c0_10 = arith.constant 0 : index
      %c0_11 = arith.constant 0 : index
      %12 = vector.load %arg7[%c0_10, %c0_11] : memref<16x32xf32, #tpu.memory_space<vmem>>, vector<16x32xf32>
      %c0_12 = arith.constant 0 : index
      %c0_13 = arith.constant 0 : index
      %13 = vector.load %arg5[%c0_12, %c0_13] : memref<1x32xf32, #tpu.memory_space<vmem>>, vector<1x32xf32>
      %14 = vector.broadcast %13 : vector<1x32xf32> to vector<16x32xf32>
      %15 = arith.addf %12, %14 : vector<16x32xf32>
      %c0_14 = arith.constant 0 : index
      %c0_15 = arith.constant 0 : index
      %16 = vector.load %arg6[%c0_14, %c0_15] : memref<16x32xf32, #tpu.memory_space<vmem>>, vector<16x32xf32>
      tpu.vector_store %arg6[%c0_14, %c0_15], %15 {strides = array<i32>} : memref<16x32xf32, #tpu.memory_space<vmem>>, vector<16x32xf32>,
    } else {
    }
    return
  }
  func.func @transform_0(%arg0: i32, %arg1: i32, %arg2: i32) -> (i32, i32) {
    %c0_i32 = arith.constant 0 : i32
    return %arg0, %arg2 : i32, i32
  }
  func.func @transform_1(%arg0: i32, %arg1: i32, %arg2: i32) -> (i32, i32) {
    %c0_i32 = arith.constant 0 : i32
    return %arg2, %arg1 : i32, i32
  }
  func.func @transform_2(%arg0: i32, %arg1: i32, %arg2: i32) -> (i32, i32) {
    %c0_i32 = arith.constant 0 : i32
    %c0_i32_0 = arith.constant 0 : i32
    return %c0_i32, %arg1 : i32, i32
  }
  func.func @transform_3(%arg0: i32, %arg1: i32, %arg2: i32) -> (i32, i32) {
    %c0_i32 = arith.constant 0 : i32
    return %arg0, %arg1 : i32, i32
  }
}

module attributes {stable_mosaic.version = 11 : i64} {
  func.func @_self_attn_kernel(%arg0: i32, %arg1: memref<1x8x96xf32, #tpu.memory_space<vmem>>, %arg2: memref<2x8xf32, #tpu.memory_space<vmem>>, %arg3: memref<1x8x32xf32, #tpu.memory_space<vmem>>) attributes {dimension_semantics = [#tpu.dimension_semantics<parallel>], iteration_bounds = array<i64: 2>, scalar_prefetch = 0 : i64, scratch_operands = 0 : i64, tpu.core_type = #tpu.core_type<tc>, window_params = [{transform_indices = @transform_0, window_bounds = array<i64: 1, 8, 96>}, {pipeline_mode = #tpu.pipeline_mode<synchronous>, transform_indices = @transform_1, window_bounds = array<i64: 2, 8>}, {transform_indices = @transform_2, window_bounds = array<i64: 1, 8, 32>}]} {
    %c0 = arith.constant 0 : index
    %c0_0 = arith.constant 0 : index
    %c0_1 = arith.constant 0 : index
    %0 = vector.load %arg1[%c0, %c0_0, %c0_1] : memref<1x8x96xf32, #tpu.memory_space<vmem>>, vector<1x8x96xf32>
    %1 = vector.shape_cast %0 : vector<1x8x96xf32> to vector<8x96xf32>
    %2 = vector.extract_strided_slice %1 {offsets = [0, 0], sizes = [8, 32], strides = [1, 1]} : vector<8x96xf32> to vector<8x32xf32>
    %3 = vector.extract_strided_slice %1 {offsets = [0, 32], sizes = [8, 32], strides = [1, 1]} : vector<8x96xf32> to vector<8x32xf32>
    %4 = vector.extract_strided_slice %1 {offsets = [0, 64], sizes = [8, 32], strides = [1, 1]} : vector<8x96xf32> to vector<8x32xf32>
    %5 = arith.index_cast %arg0 : i32 to index
    %c0_2 = arith.constant 0 : index
    %6 = vector.load %arg2[%5, %c0_2] : memref<2x8xf32, #tpu.memory_space<vmem>>, vector<1x8xf32>
    %7 = vector.shape_cast %6 : vector<1x8xf32> to vector<1x8xf32>
    %8 = vector.broadcast %7 : vector<1x8xf32> to vector<8x8xf32>
    %9 = vector.extract_strided_slice %2 {offsets = [0, 0], sizes = [8, 8], strides = [1, 1]} : vector<8x32xf32> to vector<8x8xf32>
    %10 = vector.extract_strided_slice %3 {offsets = [0, 0], sizes = [8, 8], strides = [1, 1]} : vector<8x32xf32> to vector<8x8xf32>
    %11 = vector.extract_strided_slice %4 {offsets = [0, 0], sizes = [8, 8], strides = [1, 1]} : vector<8x32xf32> to vector<8x8xf32>
    %cst = arith.constant dense<0.000000e+00> : vector<8x8xf32>
    %12 = tpu.matmul %9, %10, %cst {dimension_numbers = #tpu.dot_dimension_numbers<[1], [1], [0], [0], [0, 0, 1, 0], [], []>} : vector<8x8xf32>, vector<8x8xf32>, vector<8x8xf32> -> vector<8x8xf32>
    %cst_3 = arith.constant 0.353553385 : f32
    %13 = vector.broadcast %cst_3 : f32 to vector<8x8xf32>
    %14 = arith.mulf %12, %13 : vector<8x8xf32>
    %15 = arith.addf %14, %8 : vector<8x8xf32>
    %cst_4 = arith.constant dense<0xFF800000> : vector<8xf32>
    %16 = vector.multi_reduction <maximumf>, %15, %cst_4 [1] : vector<8x8xf32> to vector<8xf32>
    %17 = vector.shape_cast %16 : vector<8xf32> to vector<8x1xf32>
    %18 = vector.broadcast %17 : vector<8x1xf32> to vector<8x8xf32>
    %19 = arith.subf %15, %18 : vector<8x8xf32>
    %20 = math.exp %19 : vector<8x8xf32>
    %cst_5 = arith.constant dense<0.000000e+00> : vector<8xf32>
    %21 = vector.multi_reduction <add>, %20, %cst_5 [1] : vector<8x8xf32> to vector<8xf32>
    %22 = vector.shape_cast %21 : vector<8xf32> to vector<8x1xf32>
    %23 = tpu.reciprocal %22 {approx = true} : vector<8x1xf32> -> vector<8x1xf32>
    %24 = vector.broadcast %23 : vector<8x1xf32> to vector<8x8xf32>
    %25 = arith.mulf %20, %24 : vector<8x8xf32>
    %cst_6 = arith.constant dense<0.000000e+00> : vector<8x8xf32>
    %26 = tpu.matmul %25, %11, %cst_6 {dimension_numbers = #tpu.dot_dimension_numbers<[1], [0], [0], [1], [0, 0, 1, 1], [], []>} : vector<8x8xf32>, vector<8x8xf32>, vector<8x8xf32> -> vector<8x8xf32>
    %27 = vector.extract_strided_slice %2 {offsets = [0, 8], sizes = [8, 8], strides = [1, 1]} : vector<8x32xf32> to vector<8x8xf32>
    %28 = vector.extract_strided_slice %3 {offsets = [0, 8], sizes = [8, 8], strides = [1, 1]} : vector<8x32xf32> to vector<8x8xf32>
    %29 = vector.extract_strided_slice %4 {offsets = [0, 8], sizes = [8, 8], strides = [1, 1]} : vector<8x32xf32> to vector<8x8xf32>
    %cst_7 = arith.constant dense<0.000000e+00> : vector<8x8xf32>
    %30 = tpu.matmul %27, %28, %cst_7 {dimension_numbers = #tpu.dot_dimension_numbers<[1], [1], [0], [0], [0, 0, 1, 0], [], []>} : vector<8x8xf32>, vector<8x8xf32>, vector<8x8xf32> -> vector<8x8xf32>
    %cst_8 = arith.constant 0.353553385 : f32
    %31 = vector.broadcast %cst_8 : f32 to vector<8x8xf32>
    %32 = arith.mulf %30, %31 : vector<8x8xf32>
    %33 = arith.addf %32, %8 : vector<8x8xf32>
    %cst_9 = arith.constant dense<0xFF800000> : vector<8xf32>
    %34 = vector.multi_reduction <maximumf>, %33, %cst_9 [1] : vector<8x8xf32> to vector<8xf32>
    %35 = vector.shape_cast %34 : vector<8xf32> to vector<8x1xf32>
    %36 = vector.broadcast %35 : vector<8x1xf32> to vector<8x8xf32>
    %37 = arith.subf %33, %36 : vector<8x8xf32>
    %38 = math.exp %37 : vector<8x8xf32>
    %cst_10 = arith.constant dense<0.000000e+00> : vector<8xf32>
    %39 = vector.multi_reduction <add>, %38, %cst_10 [1] : vector<8x8xf32> to vector<8xf32>
    %40 = vector.shape_cast %39 : vector<8xf32> to vector<8x1xf32>
    %41 = tpu.reciprocal %40 {approx = true} : vector<8x1xf32> -> vector<8x1xf32>
    %42 = vector.broadcast %41 : vector<8x1xf32> to vector<8x8xf32>
    %43 = arith.mulf %38, %42 : vector<8x8xf32>
    %cst_11 = arith.constant dense<0.000000e+00> : vector<8x8xf32>
    %44 = tpu.matmul %43, %29, %cst_11 {dimension_numbers = #tpu.dot_dimension_numbers<[1], [0], [0], [1], [0, 0, 1, 1], [], []>} : vector<8x8xf32>, vector<8x8xf32>, vector<8x8xf32> -> vector<8x8xf32>
    %45 = vector.extract_strided_slice %2 {offsets = [0, 16], sizes = [8, 8], strides = [1, 1]} : vector<8x32xf32> to vector<8x8xf32>
    %46 = vector.extract_strided_slice %3 {offsets = [0, 16], sizes = [8, 8], strides = [1, 1]} : vector<8x32xf32> to vector<8x8xf32>
    %47 = vector.extract_strided_slice %4 {offsets = [0, 16], sizes = [8, 8], strides = [1, 1]} : vector<8x32xf32> to vector<8x8xf32>
    %cst_12 = arith.constant dense<0.000000e+00> : vector<8x8xf32>
    %48 = tpu.matmul %45, %46, %cst_12 {dimension_numbers = #tpu.dot_dimension_numbers<[1], [1], [0], [0], [0, 0, 1, 0], [], []>} : vector<8x8xf32>, vector<8x8xf32>, vector<8x8xf32> -> vector<8x8xf32>
    %cst_13 = arith.constant 0.353553385 : f32
    %49 = vector.broadcast %cst_13 : f32 to vector<8x8xf32>
    %50 = arith.mulf %48, %49 : vector<8x8xf32>
    %51 = arith.addf %50, %8 : vector<8x8xf32>
    %cst_14 = arith.constant dense<0xFF800000> : vector<8xf32>
    %52 = vector.multi_reduction <maximumf>, %51, %cst_14 [1] : vector<8x8xf32> to vector<8xf32>
    %53 = vector.shape_cast %52 : vector<8xf32> to vector<8x1xf32>
    %54 = vector.broadcast %53 : vector<8x1xf32> to vector<8x8xf32>
    %55 = arith.subf %51, %54 : vector<8x8xf32>
    %56 = math.exp %55 : vector<8x8xf32>
    %cst_15 = arith.constant dense<0.000000e+00> : vector<8xf32>
    %57 = vector.multi_reduction <add>, %56, %cst_15 [1] : vector<8x8xf32> to vector<8xf32>
    %58 = vector.shape_cast %57 : vector<8xf32> to vector<8x1xf32>
    %59 = tpu.reciprocal %58 {approx = true} : vector<8x1xf32> -> vector<8x1xf32>
    %60 = vector.broadcast %59 : vector<8x1xf32> to vector<8x8xf32>
    %61 = arith.mulf %56, %60 : vector<8x8xf32>
    %cst_16 = arith.constant dense<0.000000e+00> : vector<8x8xf32>
    %62 = tpu.matmul %61, %47, %cst_16 {dimension_numbers = #tpu.dot_dimension_numbers<[1], [0], [0], [1], [0, 0, 1, 1], [], []>} : vector<8x8xf32>, vector<8x8xf32>, vector<8x8xf32> -> vector<8x8xf32>
    %63 = vector.extract_strided_slice %2 {offsets = [0, 24], sizes = [8, 8], strides = [1, 1]} : vector<8x32xf32> to vector<8x8xf32>
    %64 = vector.extract_strided_slice %3 {offsets = [0, 24], sizes = [8, 8], strides = [1, 1]} : vector<8x32xf32> to vector<8x8xf32>
    %65 = vector.extract_strided_slice %4 {offsets = [0, 24], sizes = [8, 8], strides = [1, 1]} : vector<8x32xf32> to vector<8x8xf32>
    %cst_17 = arith.constant dense<0.000000e+00> : vector<8x8xf32>
    %66 = tpu.matmul %63, %64, %cst_17 {dimension_numbers = #tpu.dot_dimension_numbers<[1], [1], [0], [0], [0, 0, 1, 0], [], []>} : vector<8x8xf32>, vector<8x8xf32>, vector<8x8xf32> -> vector<8x8xf32>
    %cst_18 = arith.constant 0.353553385 : f32
    %67 = vector.broadcast %cst_18 : f32 to vector<8x8xf32>
    %68 = arith.mulf %66, %67 : vector<8x8xf32>
    %69 = arith.addf %68, %8 : vector<8x8xf32>
    %cst_19 = arith.constant dense<0xFF800000> : vector<8xf32>
    %70 = vector.multi_reduction <maximumf>, %69, %cst_19 [1] : vector<8x8xf32> to vector<8xf32>
    %71 = vector.shape_cast %70 : vector<8xf32> to vector<8x1xf32>
    %72 = vector.broadcast %71 : vector<8x1xf32> to vector<8x8xf32>
    %73 = arith.subf %69, %72 : vector<8x8xf32>
    %74 = math.exp %73 : vector<8x8xf32>
    %cst_20 = arith.constant dense<0.000000e+00> : vector<8xf32>
    %75 = vector.multi_reduction <add>, %74, %cst_20 [1] : vector<8x8xf32> to vector<8xf32>
    %76 = vector.shape_cast %75 : vector<8xf32> to vector<8x1xf32>
    %77 = tpu.reciprocal %76 {approx = true} : vector<8x1xf32> -> vector<8x1xf32>
    %78 = vector.broadcast %77 : vector<8x1xf32> to vector<8x8xf32>
    %79 = arith.mulf %74, %78 : vector<8x8xf32>
    %cst_21 = arith.constant dense<0.000000e+00> : vector<8x8xf32>
    %80 = tpu.matmul %79, %65, %cst_21 {dimension_numbers = #tpu.dot_dimension_numbers<[1], [0], [0], [1], [0, 0, 1, 1], [], []>} : vector<8x8xf32>, vector<8x8xf32>, vector<8x8xf32> -> vector<8x8xf32>
    %81 = tpu.concatenate %26, %44, %62, %80 in 1 : vector<8x8xf32>, vector<8x8xf32>, vector<8x8xf32>, vector<8x8xf32> -> vector<8x32xf32>
    %c0_22 = arith.constant 0 : index
    %c0_23 = arith.constant 0 : index
    %c0_24 = arith.constant 0 : index
    %82 = vector.load %arg3[%c0_22, %c0_23, %c0_24] : memref<1x8x32xf32, #tpu.memory_space<vmem>>, vector<1x8x32xf32>
    %83 = vector.shape_cast %82 : vector<1x8x32xf32> to vector<8x32xf32>
    %84 = vector.shape_cast %81 : vector<8x32xf32> to vector<1x8x32xf32>
    tpu.vector_store %arg3[%c0_22, %c0_23, %c0_24], %84 {strides = array<i32>} : memref<1x8x32xf32, #tpu.memory_space<vmem>>, vector<1x8x32xf32>,
    return
  }
  func.func @transform_0(%arg0: i32) -> (i32, i32, i32) {
    %c0_i32 = arith.constant 0 : i32
    %c0_i32_0 = arith.constant 0 : i32
    %c0_i32_1 = arith.constant 0 : i32
    return %arg0, %c0_i32, %c0_i32_0 : i32, i32, i32
  }
  func.func @transform_1(%arg0: i32) -> (i32, i32) {
    %c0_i32 = arith.constant 0 : i32
    %c0_i32_0 = arith.constant 0 : i32
    %c0_i32_1 = arith.constant 0 : i32
    return %c0_i32, %c0_i32_0 : i32, i32
  }
  func.func @transform_2(%arg0: i32) -> (i32, i32, i32) {
    %c0_i32 = arith.constant 0 : i32
    %c0_i32_0 = arith.constant 0 : i32
    %c0_i32_1 = arith.constant 0 : i32
    return %arg0, %c0_i32, %c0_i32_0 : i32, i32, i32
  }
}

module attributes {stable_mosaic.version = 11 : i64} {
  func.func @_add_ln_kernel(%arg0: i32, %arg1: memref<16x32xf32, #tpu.memory_space<vmem>>, %arg2: memref<16x32xf32, #tpu.memory_space<vmem>>, %arg3: memref<1x32xf32, #tpu.memory_space<vmem>>, %arg4: memref<1x32xf32, #tpu.memory_space<vmem>>, %arg5: memref<16x32xf32, #tpu.memory_space<vmem>>) attributes {dimension_semantics = [#tpu.dimension_semantics<parallel>], iteration_bounds = array<i64: 1>, scalar_prefetch = 0 : i64, scratch_operands = 0 : i64, tpu.core_type = #tpu.core_type<tc>, window_params = [{transform_indices = @transform_0, window_bounds = array<i64: 16, 32>}, {transform_indices = @transform_1, window_bounds = array<i64: 16, 32>}, {pipeline_mode = #tpu.pipeline_mode<synchronous>, transform_indices = @transform_2, window_bounds = array<i64: 1, 32>}, {pipeline_mode = #tpu.pipeline_mode<synchronous>, transform_indices = @transform_3, window_bounds = array<i64: 1, 32>}, {transform_indices = @transform_4, window_bounds = array<i64: 16, 32>}]} {
    %c0 = arith.constant 0 : index
    %c0_0 = arith.constant 0 : index
    %0 = vector.load %arg1[%c0, %c0_0] : memref<16x32xf32, #tpu.memory_space<vmem>>, vector<16x32xf32>
    %c0_1 = arith.constant 0 : index
    %c0_2 = arith.constant 0 : index
    %1 = vector.load %arg2[%c0_1, %c0_2] : memref<16x32xf32, #tpu.memory_space<vmem>>, vector<16x32xf32>
    %2 = arith.addf %0, %1 : vector<16x32xf32>
    %cst = arith.constant dense<0.000000e+00> : vector<16xf32>
    %3 = vector.multi_reduction <add>, %2, %cst [1] : vector<16x32xf32> to vector<16xf32>
    %4 = vector.shape_cast %3 : vector<16xf32> to vector<16x1xf32>
    %cst_3 = arith.constant 3.200000e+01 : f32
    %5 = vector.broadcast %cst_3 : f32 to vector<16x1xf32>
    %6 = arith.divf %4, %5 : vector<16x1xf32>
    %7 = vector.broadcast %6 : vector<16x1xf32> to vector<16x32xf32>
    %8 = arith.subf %2, %7 : vector<16x32xf32>
    %9 = arith.mulf %8, %8 : vector<16x32xf32>
    %cst_4 = arith.constant dense<0.000000e+00> : vector<16xf32>
    %10 = vector.multi_reduction <add>, %9, %cst_4 [1] : vector<16x32xf32> to vector<16xf32>
    %11 = vector.shape_cast %10 : vector<16xf32> to vector<16x1xf32>
    %cst_5 = arith.constant 3.200000e+01 : f32
    %12 = vector.broadcast %cst_5 : f32 to vector<16x1xf32>
    %13 = arith.divf %11, %12 : vector<16x1xf32>
    %cst_6 = arith.constant 9.99999974E-6 : f32
    %14 = vector.broadcast %cst_6 : f32 to vector<16x1xf32>
    %15 = arith.addf %13, %14 : vector<16x1xf32>
    %16 = math.rsqrt %15 : vector<16x1xf32>
    %17 = vector.broadcast %16 : vector<16x1xf32> to vector<16x32xf32>
    %18 = arith.mulf %8, %17 : vector<16x32xf32>
    %c0_7 = arith.constant 0 : index
    %c0_8 = arith.constant 0 : index
    %19 = vector.load %arg3[%c0_7, %c0_8] : memref<1x32xf32, #tpu.memory_space<vmem>>, vector<1x32xf32>
    %20 = vector.broadcast %19 : vector<1x32xf32> to vector<16x32xf32>
    %21 = arith.mulf %18, %20 : vector<16x32xf32>
    %c0_9 = arith.constant 0 : index
    %c0_10 = arith.constant 0 : index
    %22 = vector.load %arg4[%c0_9, %c0_10] : memref<1x32xf32, #tpu.memory_space<vmem>>, vector<1x32xf32>
    %23 = vector.broadcast %22 : vector<1x32xf32> to vector<16x32xf32>
    %24 = arith.addf %21, %23 : vector<16x32xf32>
    %c0_11 = arith.constant 0 : index
    %c0_12 = arith.constant 0 : index
    %25 = vector.load %arg5[%c0_11, %c0_12] : memref<16x32xf32, #tpu.memory_space<vmem>>, vector<16x32xf32>
    tpu.vector_store %arg5[%c0_11, %c0_12], %24 {strides = array<i32>} : memref<16x32xf32, #tpu.memory_space<vmem>>, vector<16x32xf32>,
    return
  }
  func.func @transform_0(%arg0: i32) -> (i32, i32) {
    %c0_i32 = arith.constant 0 : i32
    %c0_i32_0 = arith.constant 0 : i32
    return %arg0, %c0_i32 : i32, i32
  }
  func.func @transform_1(%arg0: i32) -> (i32, i32) {
    %c0_i32 = arith.constant 0 : i32
    %c0_i32_0 = arith.constant 0 : i32
    return %arg0, %c0_i32 : i32, i32
  }
  func.func @transform_2(%arg0: i32) -> (i32, i32) {
    %c0_i32 = arith.constant 0 : i32
    %c0_i32_0 = arith.constant 0 : i32
    %c0_i32_1 = arith.constant 0 : i32
    return %c0_i32, %c0_i32_0 : i32, i32
  }
  func.func @transform_3(%arg0: i32) -> (i32, i32) {
    %c0_i32 = arith.constant 0 : i32
    %c0_i32_0 = arith.constant 0 : i32
    %c0_i32_1 = arith.constant 0 : i32
    return %c0_i32, %c0_i32_0 : i32, i32
  }
  func.func @transform_4(%arg0: i32) -> (i32, i32) {
    %c0_i32 = arith.constant 0 : i32
    %c0_i32_0 = arith.constant 0 : i32
    return %arg0, %c0_i32 : i32, i32
  }
}

module attributes {stable_mosaic.version = 11 : i64} {
  func.func @_ffn_kernel(%arg0: i32, %arg1: memref<16x32xf32, #tpu.memory_space<vmem>>, %arg2: memref<32x64xf32, #tpu.memory_space<vmem>>, %arg3: memref<1x64xf32, #tpu.memory_space<vmem>>, %arg4: memref<64x32xf32, #tpu.memory_space<vmem>>, %arg5: memref<1x32xf32, #tpu.memory_space<vmem>>, %arg6: memref<16x32xf32, #tpu.memory_space<vmem>>) attributes {dimension_semantics = [#tpu.dimension_semantics<parallel>], iteration_bounds = array<i64: 1>, scalar_prefetch = 0 : i64, scratch_operands = 0 : i64, tpu.core_type = #tpu.core_type<tc>, window_params = [{transform_indices = @transform_0, window_bounds = array<i64: 16, 32>}, {pipeline_mode = #tpu.pipeline_mode<synchronous>, transform_indices = @transform_1, window_bounds = array<i64: 32, 64>}, {pipeline_mode = #tpu.pipeline_mode<synchronous>, transform_indices = @transform_2, window_bounds = array<i64: 1, 64>}, {pipeline_mode = #tpu.pipeline_mode<synchronous>, transform_indices = @transform_3, window_bounds = array<i64: 64, 32>}, {pipeline_mode = #tpu.pipeline_mode<synchronous>, transform_indices = @transform_4, window_bounds = array<i64: 1, 32>}, {transform_indices = @transform_5, window_bounds = array<i64: 16, 32>}]} {
    %c0 = arith.constant 0 : index
    %c0_0 = arith.constant 0 : index
    %0 = vector.load %arg1[%c0, %c0_0] : memref<16x32xf32, #tpu.memory_space<vmem>>, vector<16x32xf32>
    %c0_1 = arith.constant 0 : index
    %c0_2 = arith.constant 0 : index
    %1 = vector.load %arg2[%c0_1, %c0_2] : memref<32x64xf32, #tpu.memory_space<vmem>>, vector<32x64xf32>
    %cst = arith.constant dense<0.000000e+00> : vector<16x64xf32>
    %2 = tpu.matmul %0, %1, %cst {dimension_numbers = #tpu.dot_dimension_numbers<[1], [0], [0], [1], [0, 0, 1, 1], [], []>} : vector<16x32xf32>, vector<32x64xf32>, vector<16x64xf32> -> vector<16x64xf32>
    %c0_3 = arith.constant 0 : index
    %c0_4 = arith.constant 0 : index
    %3 = vector.load %arg3[%c0_3, %c0_4] : memref<1x64xf32, #tpu.memory_space<vmem>>, vector<1x64xf32>
    %4 = vector.broadcast %3 : vector<1x64xf32> to vector<16x64xf32>
    %5 = arith.addf %2, %4 : vector<16x64xf32>
    %cst_5 = arith.constant 0.000000e+00 : f32
    %6 = vector.broadcast %cst_5 : f32 to vector<16x64xf32>
    %7 = arith.maximumf %5, %6 : vector<16x64xf32>
    %c0_6 = arith.constant 0 : index
    %c0_7 = arith.constant 0 : index
    %8 = vector.load %arg4[%c0_6, %c0_7] : memref<64x32xf32, #tpu.memory_space<vmem>>, vector<64x32xf32>
    %cst_8 = arith.constant dense<0.000000e+00> : vector<16x32xf32>
    %9 = tpu.matmul %7, %8, %cst_8 {dimension_numbers = #tpu.dot_dimension_numbers<[1], [0], [0], [1], [0, 0, 1, 1], [], []>} : vector<16x64xf32>, vector<64x32xf32>, vector<16x32xf32> -> vector<16x32xf32>
    %c0_9 = arith.constant 0 : index
    %c0_10 = arith.constant 0 : index
    %10 = vector.load %arg5[%c0_9, %c0_10] : memref<1x32xf32, #tpu.memory_space<vmem>>, vector<1x32xf32>
    %11 = vector.broadcast %10 : vector<1x32xf32> to vector<16x32xf32>
    %12 = arith.addf %9, %11 : vector<16x32xf32>
    %c0_11 = arith.constant 0 : index
    %c0_12 = arith.constant 0 : index
    %13 = vector.load %arg6[%c0_11, %c0_12] : memref<16x32xf32, #tpu.memory_space<vmem>>, vector<16x32xf32>
    tpu.vector_store %arg6[%c0_11, %c0_12], %12 {strides = array<i32>} : memref<16x32xf32, #tpu.memory_space<vmem>>, vector<16x32xf32>,
    return
  }
  func.func @transform_0(%arg0: i32) -> (i32, i32) {
    %c0_i32 = arith.constant 0 : i32
    %c0_i32_0 = arith.constant 0 : i32
    return %arg0, %c0_i32 : i32, i32
  }
  func.func @transform_1(%arg0: i32) -> (i32, i32) {
    %c0_i32 = arith.constant 0 : i32
    %c0_i32_0 = arith.constant 0 : i32
    %c0_i32_1 = arith.constant 0 : i32
    return %c0_i32, %c0_i32_0 : i32, i32
  }
  func.func @transform_2(%arg0: i32) -> (i32, i32) {
    %c0_i32 = arith.constant 0 : i32
    %c0_i32_0 = arith.constant 0 : i32
    %c0_i32_1 = arith.constant 0 : i32
    return %c0_i32, %c0_i32_0 : i32, i32
  }
  func.func @transform_3(%arg0: i32) -> (i32, i32) {
    %c0_i32 = arith.constant 0 : i32
    %c0_i32_0 = arith.constant 0 : i32
    %c0_i32_1 = arith.constant 0 : i32
    return %c0_i32, %c0_i32_0 : i32, i32
  }
  func.func @transform_4(%arg0: i32) -> (i32, i32) {
    %c0_i32 = arith.constant 0 : i32
    %c0_i32_0 = arith.constant 0 : i32
    %c0_i32_1 = arith.constant 0 : i32
    return %c0_i32, %c0_i32_0 : i32, i32
  }
  func.func @transform_5(%arg0: i32) -> (i32, i32) {
    %c0_i32 = arith.constant 0 : i32
    %c0_i32_0 = arith.constant 0 : i32
    return %arg0, %c0_i32 : i32, i32
  }
}

module attributes {stable_mosaic.version = 11 : i64} {
  func.func @_linear_kernel(%arg0: i32, %arg1: i32, %arg2: i32, %arg3: memref<16x32xf32, #tpu.memory_space<vmem>>, %arg4: memref<32x64xf32, #tpu.memory_space<vmem>>, %arg5: memref<1x64xf32, #tpu.memory_space<vmem>>, %arg6: memref<16x64xf32, #tpu.memory_space<vmem>>, %arg7: memref<16x64xf32, #tpu.memory_space<vmem>>) attributes {dimension_semantics = [#tpu.dimension_semantics<parallel>, #tpu.dimension_semantics<parallel>, #tpu.dimension_semantics<arbitrary>], iteration_bounds = array<i64: 1, 1, 1>, scalar_prefetch = 0 : i64, scratch_operands = 1 : i64, tpu.core_type = #tpu.core_type<tc>, window_params = [{transform_indices = @transform_0, window_bounds = array<i64: 16, 32>}, {transform_indices = @transform_1, window_bounds = array<i64: 32, 64>}, {transform_indices = @transform_2, window_bounds = array<i64: 1, 64>}, {transform_indices = @transform_3, window_bounds = array<i64: 16, 64>}]} {
    %c0_i32 = arith.constant 0 : i32
    %0 = arith.cmpi eq, %arg2, %c0_i32 : i32
    %1 = arith.extui %0 : i1 to i32
    %c0_i32_0 = arith.constant 0 : i32
    %2 = arith.cmpi ne, %1, %c0_i32_0 : i32
    scf.if %2 {
      %cst_10 = arith.constant 0.000000e+00 : f32
      %12 = vector.broadcast %cst_10 : f32 to vector<16x64xf32>
      %c0_11 = arith.constant 0 : index
      %c0_12 = arith.constant 0 : index
      %13 = vector.load %arg7[%c0_11, %c0_12] : memref<16x64xf32, #tpu.memory_space<vmem>>, vector<16x64xf32>
      tpu.vector_store %arg7[%c0_11, %c0_12], %12 {strides = array<i32>} : memref<16x64xf32, #tpu.memory_space<vmem>>, vector<16x64xf32>,
    } else {
    }
    %c0 = arith.constant 0 : index
    %c0_1 = arith.constant 0 : index
    %3 = vector.load %arg7[%c0, %c0_1] : memref<16x64xf32, #tpu.memory_space<vmem>>, vector<16x64xf32>
    %c0_2 = arith.constant 0 : index
    %c0_3 = arith.constant 0 : index
    %4 = vector.load %arg3[%c0_2, %c0_3] : memref<16x32xf32, #tpu.memory_space<vmem>>, vector<16x32xf32>
    %c0_4 = arith.constant 0 : index
    %c0_5 = arith.constant 0 : index
    %5 = vector.load %arg4[%c0_4, %c0_5] : memref<32x64xf32, #tpu.memory_space<vmem>>, vector<32x64xf32>
    %cst = arith.constant dense<0.000000e+00> : vector<16x64xf32>
    %6 = tpu.matmul %4, %5, %cst {dimension_numbers = #tpu.dot_dimension_numbers<[1], [0], [0], [1], [0, 0, 1, 1], [], []>} : vector<16x32xf32>, vector<32x64xf32>, vector<16x64xf32> -> vector<16x64xf32>
    %7 = arith.addf %3, %6 : vector<16x64xf32>
    %c0_6 = arith.constant 0 : index
    %c0_7 = arith.constant 0 : index
    %8 = vector.load %arg7[%c0_6, %c0_7] : memref<16x64xf32, #tpu.memory_space<vmem>>, vector<16x64xf32>
    tpu.vector_store %arg7[%c0_6, %c0_7], %7 {strides = array<i32>} : memref<16x64xf32, #tpu.memory_space<vmem>>, vector<16x64xf32>,
    %c0_i32_8 = arith.constant 0 : i32
    %9 = arith.cmpi eq, %arg2, %c0_i32_8 : i32
    %10 = arith.extui %9 : i1 to i32
    %c0_i32_9 = arith.constant 0 : i32
    %11 = arith.cmpi ne, %10, %c0_i32_9 : i32
    scf.if %11 {
      %c0_10 = arith.constant 0 : index
      %c0_11 = arith.constant 0 : index
      %12 = vector.load %arg7[%c0_10, %c0_11] : memref<16x64xf32, #tpu.memory_space<vmem>>, vector<16x64xf32>
      %c0_12 = arith.constant 0 : index
      %c0_13 = arith.constant 0 : index
      %13 = vector.load %arg5[%c0_12, %c0_13] : memref<1x64xf32, #tpu.memory_space<vmem>>, vector<1x64xf32>
      %14 = vector.broadcast %13 : vector<1x64xf32> to vector<16x64xf32>
      %15 = arith.addf %12, %14 : vector<16x64xf32>
      %c0_14 = arith.constant 0 : index
      %c0_15 = arith.constant 0 : index
      %16 = vector.load %arg6[%c0_14, %c0_15] : memref<16x64xf32, #tpu.memory_space<vmem>>, vector<16x64xf32>
      tpu.vector_store %arg6[%c0_14, %c0_15], %15 {strides = array<i32>} : memref<16x64xf32, #tpu.memory_space<vmem>>, vector<16x64xf32>,
    } else {
    }
    return
  }
  func.func @transform_0(%arg0: i32, %arg1: i32, %arg2: i32) -> (i32, i32) {
    %c0_i32 = arith.constant 0 : i32
    return %arg0, %arg2 : i32, i32
  }
  func.func @transform_1(%arg0: i32, %arg1: i32, %arg2: i32) -> (i32, i32) {
    %c0_i32 = arith.constant 0 : i32
    return %arg2, %arg1 : i32, i32
  }
  func.func @transform_2(%arg0: i32, %arg1: i32, %arg2: i32) -> (i32, i32) {
    %c0_i32 = arith.constant 0 : i32
    %c0_i32_0 = arith.constant 0 : i32
    return %c0_i32, %arg1 : i32, i32
  }
  func.func @transform_3(%arg0: i32, %arg1: i32, %arg2: i32) -> (i32, i32) {
    %c0_i32 = arith.constant 0 : i32
    return %arg0, %arg1 : i32, i32
  }
}

module attributes {stable_mosaic.version = 11 : i64} {
  func.func @_self_attn_kernel(%arg0: i32, %arg1: memref<1x8x96xf32, #tpu.memory_space<vmem>>, %arg2: memref<2x8xf32, #tpu.memory_space<vmem>>, %arg3: memref<1x8x32xf32, #tpu.memory_space<vmem>>) attributes {dimension_semantics = [#tpu.dimension_semantics<parallel>], iteration_bounds = array<i64: 2>, scalar_prefetch = 0 : i64, scratch_operands = 0 : i64, tpu.core_type = #tpu.core_type<tc>, window_params = [{transform_indices = @transform_0, window_bounds = array<i64: 1, 8, 96>}, {pipeline_mode = #tpu.pipeline_mode<synchronous>, transform_indices = @transform_1, window_bounds = array<i64: 2, 8>}, {transform_indices = @transform_2, window_bounds = array<i64: 1, 8, 32>}]} {
    %c0 = arith.constant 0 : index
    %c0_0 = arith.constant 0 : index
    %c0_1 = arith.constant 0 : index
    %0 = vector.load %arg1[%c0, %c0_0, %c0_1] : memref<1x8x96xf32, #tpu.memory_space<vmem>>, vector<1x8x96xf32>
    %1 = vector.shape_cast %0 : vector<1x8x96xf32> to vector<8x96xf32>
    %2 = vector.extract_strided_slice %1 {offsets = [0, 0], sizes = [8, 32], strides = [1, 1]} : vector<8x96xf32> to vector<8x32xf32>
    %3 = vector.extract_strided_slice %1 {offsets = [0, 32], sizes = [8, 32], strides = [1, 1]} : vector<8x96xf32> to vector<8x32xf32>
    %4 = vector.extract_strided_slice %1 {offsets = [0, 64], sizes = [8, 32], strides = [1, 1]} : vector<8x96xf32> to vector<8x32xf32>
    %5 = arith.index_cast %arg0 : i32 to index
    %c0_2 = arith.constant 0 : index
    %6 = vector.load %arg2[%5, %c0_2] : memref<2x8xf32, #tpu.memory_space<vmem>>, vector<1x8xf32>
    %7 = vector.shape_cast %6 : vector<1x8xf32> to vector<1x8xf32>
    %8 = vector.broadcast %7 : vector<1x8xf32> to vector<8x8xf32>
    %9 = tpu.iota {dimensions = array<i32: 0>} : vector<8x8xi32>
    %10 = tpu.iota {dimensions = array<i32: 1>} : vector<8x8xi32>
    %11 = arith.cmpi sgt, %10, %9 : vector<8x8xi32>
    %cst = arith.constant -1.000000e+30 : f32
    %12 = vector.broadcast %cst : f32 to vector<8x8xf32>
    %13 = arith.select %11, %12, %8 : vector<8x8xi1>, vector<8x8xf32>
    %14 = vector.extract_strided_slice %2 {offsets = [0, 0], sizes = [8, 8], strides = [1, 1]} : vector<8x32xf32> to vector<8x8xf32>
    %15 = vector.extract_strided_slice %3 {offsets = [0, 0], sizes = [8, 8], strides = [1, 1]} : vector<8x32xf32> to vector<8x8xf32>
    %16 = vector.extract_strided_slice %4 {offsets = [0, 0], sizes = [8, 8], strides = [1, 1]} : vector<8x32xf32> to vector<8x8xf32>
    %cst_3 = arith.constant dense<0.000000e+00> : vector<8x8xf32>
    %17 = tpu.matmul %14, %15, %cst_3 {dimension_numbers = #tpu.dot_dimension_numbers<[1], [1], [0], [0], [0, 0, 1, 0], [], []>} : vector<8x8xf32>, vector<8x8xf32>, vector<8x8xf32> -> vector<8x8xf32>
    %cst_4 = arith.constant 0.353553385 : f32
    %18 = vector.broadcast %cst_4 : f32 to vector<8x8xf32>
    %19 = arith.mulf %17, %18 : vector<8x8xf32>
    %20 = arith.addf %19, %13 : vector<8x8xf32>
    %cst_5 = arith.constant dense<0xFF800000> : vector<8xf32>
    %21 = vector.multi_reduction <maximumf>, %20, %cst_5 [1] : vector<8x8xf32> to vector<8xf32>
    %22 = vector.shape_cast %21 : vector<8xf32> to vector<8x1xf32>
    %23 = vector.broadcast %22 : vector<8x1xf32> to vector<8x8xf32>
    %24 = arith.subf %20, %23 : vector<8x8xf32>
    %25 = math.exp %24 : vector<8x8xf32>
    %cst_6 = arith.constant dense<0.000000e+00> : vector<8xf32>
    %26 = vector.multi_reduction <add>, %25, %cst_6 [1] : vector<8x8xf32> to vector<8xf32>
    %27 = vector.shape_cast %26 : vector<8xf32> to vector<8x1xf32>
    %28 = tpu.reciprocal %27 {approx = true} : vector<8x1xf32> -> vector<8x1xf32>
    %29 = vector.broadcast %28 : vector<8x1xf32> to vector<8x8xf32>
    %30 = arith.mulf %25, %29 : vector<8x8xf32>
    %cst_7 = arith.constant dense<0.000000e+00> : vector<8x8xf32>
    %31 = tpu.matmul %30, %16, %cst_7 {dimension_numbers = #tpu.dot_dimension_numbers<[1], [0], [0], [1], [0, 0, 1, 1], [], []>} : vector<8x8xf32>, vector<8x8xf32>, vector<8x8xf32> -> vector<8x8xf32>
    %32 = vector.extract_strided_slice %2 {offsets = [0, 8], sizes = [8, 8], strides = [1, 1]} : vector<8x32xf32> to vector<8x8xf32>
    %33 = vector.extract_strided_slice %3 {offsets = [0, 8], sizes = [8, 8], strides = [1, 1]} : vector<8x32xf32> to vector<8x8xf32>
    %34 = vector.extract_strided_slice %4 {offsets = [0, 8], sizes = [8, 8], strides = [1, 1]} : vector<8x32xf32> to vector<8x8xf32>
    %cst_8 = arith.constant dense<0.000000e+00> : vector<8x8xf32>
    %35 = tpu.matmul %32, %33, %cst_8 {dimension_numbers = #tpu.dot_dimension_numbers<[1], [1], [0], [0], [0, 0, 1, 0], [], []>} : vector<8x8xf32>, vector<8x8xf32>, vector<8x8xf32> -> vector<8x8xf32>
    %cst_9 = arith.constant 0.353553385 : f32
    %36 = vector.broadcast %cst_9 : f32 to vector<8x8xf32>
    %37 = arith.mulf %35, %36 : vector<8x8xf32>
    %38 = arith.addf %37, %13 : vector<8x8xf32>
    %cst_10 = arith.constant dense<0xFF800000> : vector<8xf32>
    %39 = vector.multi_reduction <maximumf>, %38, %cst_10 [1] : vector<8x8xf32> to vector<8xf32>
    %40 = vector.shape_cast %39 : vector<8xf32> to vector<8x1xf32>
    %41 = vector.broadcast %40 : vector<8x1xf32> to vector<8x8xf32>
    %42 = arith.subf %38, %41 : vector<8x8xf32>
    %43 = math.exp %42 : vector<8x8xf32>
    %cst_11 = arith.constant dense<0.000000e+00> : vector<8xf32>
    %44 = vector.multi_reduction <add>, %43, %cst_11 [1] : vector<8x8xf32> to vector<8xf32>
    %45 = vector.shape_cast %44 : vector<8xf32> to vector<8x1xf32>
    %46 = tpu.reciprocal %45 {approx = true} : vector<8x1xf32> -> vector<8x1xf32>
    %47 = vector.broadcast %46 : vector<8x1xf32> to vector<8x8xf32>
    %48 = arith.mulf %43, %47 : vector<8x8xf32>
    %cst_12 = arith.constant dense<0.000000e+00> : vector<8x8xf32>
    %49 = tpu.matmul %48, %34, %cst_12 {dimension_numbers = #tpu.dot_dimension_numbers<[1], [0], [0], [1], [0, 0, 1, 1], [], []>} : vector<8x8xf32>, vector<8x8xf32>, vector<8x8xf32> -> vector<8x8xf32>
    %50 = vector.extract_strided_slice %2 {offsets = [0, 16], sizes = [8, 8], strides = [1, 1]} : vector<8x32xf32> to vector<8x8xf32>
    %51 = vector.extract_strided_slice %3 {offsets = [0, 16], sizes = [8, 8], strides = [1, 1]} : vector<8x32xf32> to vector<8x8xf32>
    %52 = vector.extract_strided_slice %4 {offsets = [0, 16], sizes = [8, 8], strides = [1, 1]} : vector<8x32xf32> to vector<8x8xf32>
    %cst_13 = arith.constant dense<0.000000e+00> : vector<8x8xf32>
    %53 = tpu.matmul %50, %51, %cst_13 {dimension_numbers = #tpu.dot_dimension_numbers<[1], [1], [0], [0], [0, 0, 1, 0], [], []>} : vector<8x8xf32>, vector<8x8xf32>, vector<8x8xf32> -> vector<8x8xf32>
    %cst_14 = arith.constant 0.353553385 : f32
    %54 = vector.broadcast %cst_14 : f32 to vector<8x8xf32>
    %55 = arith.mulf %53, %54 : vector<8x8xf32>
    %56 = arith.addf %55, %13 : vector<8x8xf32>
    %cst_15 = arith.constant dense<0xFF800000> : vector<8xf32>
    %57 = vector.multi_reduction <maximumf>, %56, %cst_15 [1] : vector<8x8xf32> to vector<8xf32>
    %58 = vector.shape_cast %57 : vector<8xf32> to vector<8x1xf32>
    %59 = vector.broadcast %58 : vector<8x1xf32> to vector<8x8xf32>
    %60 = arith.subf %56, %59 : vector<8x8xf32>
    %61 = math.exp %60 : vector<8x8xf32>
    %cst_16 = arith.constant dense<0.000000e+00> : vector<8xf32>
    %62 = vector.multi_reduction <add>, %61, %cst_16 [1] : vector<8x8xf32> to vector<8xf32>
    %63 = vector.shape_cast %62 : vector<8xf32> to vector<8x1xf32>
    %64 = tpu.reciprocal %63 {approx = true} : vector<8x1xf32> -> vector<8x1xf32>
    %65 = vector.broadcast %64 : vector<8x1xf32> to vector<8x8xf32>
    %66 = arith.mulf %61, %65 : vector<8x8xf32>
    %cst_17 = arith.constant dense<0.000000e+00> : vector<8x8xf32>
    %67 = tpu.matmul %66, %52, %cst_17 {dimension_numbers = #tpu.dot_dimension_numbers<[1], [0], [0], [1], [0, 0, 1, 1], [], []>} : vector<8x8xf32>, vector<8x8xf32>, vector<8x8xf32> -> vector<8x8xf32>
    %68 = vector.extract_strided_slice %2 {offsets = [0, 24], sizes = [8, 8], strides = [1, 1]} : vector<8x32xf32> to vector<8x8xf32>
    %69 = vector.extract_strided_slice %3 {offsets = [0, 24], sizes = [8, 8], strides = [1, 1]} : vector<8x32xf32> to vector<8x8xf32>
    %70 = vector.extract_strided_slice %4 {offsets = [0, 24], sizes = [8, 8], strides = [1, 1]} : vector<8x32xf32> to vector<8x8xf32>
    %cst_18 = arith.constant dense<0.000000e+00> : vector<8x8xf32>
    %71 = tpu.matmul %68, %69, %cst_18 {dimension_numbers = #tpu.dot_dimension_numbers<[1], [1], [0], [0], [0, 0, 1, 0], [], []>} : vector<8x8xf32>, vector<8x8xf32>, vector<8x8xf32> -> vector<8x8xf32>
    %cst_19 = arith.constant 0.353553385 : f32
    %72 = vector.broadcast %cst_19 : f32 to vector<8x8xf32>
    %73 = arith.mulf %71, %72 : vector<8x8xf32>
    %74 = arith.addf %73, %13 : vector<8x8xf32>
    %cst_20 = arith.constant dense<0xFF800000> : vector<8xf32>
    %75 = vector.multi_reduction <maximumf>, %74, %cst_20 [1] : vector<8x8xf32> to vector<8xf32>
    %76 = vector.shape_cast %75 : vector<8xf32> to vector<8x1xf32>
    %77 = vector.broadcast %76 : vector<8x1xf32> to vector<8x8xf32>
    %78 = arith.subf %74, %77 : vector<8x8xf32>
    %79 = math.exp %78 : vector<8x8xf32>
    %cst_21 = arith.constant dense<0.000000e+00> : vector<8xf32>
    %80 = vector.multi_reduction <add>, %79, %cst_21 [1] : vector<8x8xf32> to vector<8xf32>
    %81 = vector.shape_cast %80 : vector<8xf32> to vector<8x1xf32>
    %82 = tpu.reciprocal %81 {approx = true} : vector<8x1xf32> -> vector<8x1xf32>
    %83 = vector.broadcast %82 : vector<8x1xf32> to vector<8x8xf32>
    %84 = arith.mulf %79, %83 : vector<8x8xf32>
    %cst_22 = arith.constant dense<0.000000e+00> : vector<8x8xf32>
    %85 = tpu.matmul %84, %70, %cst_22 {dimension_numbers = #tpu.dot_dimension_numbers<[1], [0], [0], [1], [0, 0, 1, 1], [], []>} : vector<8x8xf32>, vector<8x8xf32>, vector<8x8xf32> -> vector<8x8xf32>
    %86 = tpu.concatenate %31, %49, %67, %85 in 1 : vector<8x8xf32>, vector<8x8xf32>, vector<8x8xf32>, vector<8x8xf32> -> vector<8x32xf32>
    %c0_23 = arith.constant 0 : index
    %c0_24 = arith.constant 0 : index
    %c0_25 = arith.constant 0 : index
    %87 = vector.load %arg3[%c0_23, %c0_24, %c0_25] : memref<1x8x32xf32, #tpu.memory_space<vmem>>, vector<1x8x32xf32>
    %88 = vector.shape_cast %87 : vector<1x8x32xf32> to vector<8x32xf32>
    %89 = vector.shape_cast %86 : vector<8x32xf32> to vector<1x8x32xf32>
    tpu.vector_store %arg3[%c0_23, %c0_24, %c0_25], %89 {strides = array<i32>} : memref<1x8x32xf32, #tpu.memory_space<vmem>>, vector<1x8x32xf32>,
    return
  }
  func.func @transform_0(%arg0: i32) -> (i32, i32, i32) {
    %c0_i32 = arith.constant 0 : i32
    %c0_i32_0 = arith.constant 0 : i32
    %c0_i32_1 = arith.constant 0 : i32
    return %arg0, %c0_i32, %c0_i32_0 : i32, i32, i32
  }
  func.func @transform_1(%arg0: i32) -> (i32, i32) {
    %c0_i32 = arith.constant 0 : i32
    %c0_i32_0 = arith.constant 0 : i32
    %c0_i32_1 = arith.constant 0 : i32
    return %c0_i32, %c0_i32_0 : i32, i32
  }
  func.func @transform_2(%arg0: i32) -> (i32, i32, i32) {
    %c0_i32 = arith.constant 0 : i32
    %c0_i32_0 = arith.constant 0 : i32
    %c0_i32_1 = arith.constant 0 : i32
    return %arg0, %c0_i32, %c0_i32_0 : i32, i32, i32
  }
}

module attributes {stable_mosaic.version = 11 : i64} {
  func.func @_cross_attn_kernel(%arg0: i32, %arg1: memref<1x8x32xf32, #tpu.memory_space<vmem>>, %arg2: memref<1x8x64xf32, #tpu.memory_space<vmem>>, %arg3: memref<2x8xf32, #tpu.memory_space<vmem>>, %arg4: memref<1x8x32xf32, #tpu.memory_space<vmem>>) attributes {dimension_semantics = [#tpu.dimension_semantics<parallel>], iteration_bounds = array<i64: 2>, scalar_prefetch = 0 : i64, scratch_operands = 0 : i64, tpu.core_type = #tpu.core_type<tc>, window_params = [{transform_indices = @transform_0, window_bounds = array<i64: 1, 8, 32>}, {transform_indices = @transform_1, window_bounds = array<i64: 1, 8, 64>}, {pipeline_mode = #tpu.pipeline_mode<synchronous>, transform_indices = @transform_2, window_bounds = array<i64: 2, 8>}, {transform_indices = @transform_3, window_bounds = array<i64: 1, 8, 32>}]} {
    %c0 = arith.constant 0 : index
    %c0_0 = arith.constant 0 : index
    %c0_1 = arith.constant 0 : index
    %0 = vector.load %arg1[%c0, %c0_0, %c0_1] : memref<1x8x32xf32, #tpu.memory_space<vmem>>, vector<1x8x32xf32>
    %1 = vector.shape_cast %0 : vector<1x8x32xf32> to vector<8x32xf32>
    %c0_2 = arith.constant 0 : index
    %c0_3 = arith.constant 0 : index
    %c0_4 = arith.constant 0 : index
    %2 = vector.load %arg2[%c0_2, %c0_3, %c0_4] : memref<1x8x64xf32, #tpu.memory_space<vmem>>, vector<1x8x64xf32>
    %3 = vector.shape_cast %2 : vector<1x8x64xf32> to vector<8x64xf32>
    %4 = vector.extract_strided_slice %3 {offsets = [0, 0], sizes = [8, 32], strides = [1, 1]} : vector<8x64xf32> to vector<8x32xf32>
    %5 = vector.extract_strided_slice %3 {offsets = [0, 32], sizes = [8, 32], strides = [1, 1]} : vector<8x64xf32> to vector<8x32xf32>
    %6 = arith.index_cast %arg0 : i32 to index
    %c0_5 = arith.constant 0 : index
    %7 = vector.load %arg3[%6, %c0_5] : memref<2x8xf32, #tpu.memory_space<vmem>>, vector<1x8xf32>
    %8 = vector.shape_cast %7 : vector<1x8xf32> to vector<1x8xf32>
    %9 = vector.broadcast %8 : vector<1x8xf32> to vector<8x8xf32>
    %10 = vector.extract_strided_slice %1 {offsets = [0, 0], sizes = [8, 8], strides = [1, 1]} : vector<8x32xf32> to vector<8x8xf32>
    %11 = vector.extract_strided_slice %4 {offsets = [0, 0], sizes = [8, 8], strides = [1, 1]} : vector<8x32xf32> to vector<8x8xf32>
    %12 = vector.extract_strided_slice %5 {offsets = [0, 0], sizes = [8, 8], strides = [1, 1]} : vector<8x32xf32> to vector<8x8xf32>
    %cst = arith.constant dense<0.000000e+00> : vector<8x8xf32>
    %13 = tpu.matmul %10, %11, %cst {dimension_numbers = #tpu.dot_dimension_numbers<[1], [1], [0], [0], [0, 0, 1, 0], [], []>} : vector<8x8xf32>, vector<8x8xf32>, vector<8x8xf32> -> vector<8x8xf32>
    %cst_6 = arith.constant 0.353553385 : f32
    %14 = vector.broadcast %cst_6 : f32 to vector<8x8xf32>
    %15 = arith.mulf %13, %14 : vector<8x8xf32>
    %16 = arith.addf %15, %9 : vector<8x8xf32>
    %cst_7 = arith.constant dense<0xFF800000> : vector<8xf32>
    %17 = vector.multi_reduction <maximumf>, %16, %cst_7 [1] : vector<8x8xf32> to vector<8xf32>
    %18 = vector.shape_cast %17 : vector<8xf32> to vector<8x1xf32>
    %19 = vector.broadcast %18 : vector<8x1xf32> to vector<8x8xf32>
    %20 = arith.subf %16, %19 : vector<8x8xf32>
    %21 = math.exp %20 : vector<8x8xf32>
    %cst_8 = arith.constant dense<0.000000e+00> : vector<8xf32>
    %22 = vector.multi_reduction <add>, %21, %cst_8 [1] : vector<8x8xf32> to vector<8xf32>
    %23 = vector.shape_cast %22 : vector<8xf32> to vector<8x1xf32>
    %24 = tpu.reciprocal %23 {approx = true} : vector<8x1xf32> -> vector<8x1xf32>
    %25 = vector.broadcast %24 : vector<8x1xf32> to vector<8x8xf32>
    %26 = arith.mulf %21, %25 : vector<8x8xf32>
    %cst_9 = arith.constant dense<0.000000e+00> : vector<8x8xf32>
    %27 = tpu.matmul %26, %12, %cst_9 {dimension_numbers = #tpu.dot_dimension_numbers<[1], [0], [0], [1], [0, 0, 1, 1], [], []>} : vector<8x8xf32>, vector<8x8xf32>, vector<8x8xf32> -> vector<8x8xf32>
    %28 = vector.extract_strided_slice %1 {offsets = [0, 8], sizes = [8, 8], strides = [1, 1]} : vector<8x32xf32> to vector<8x8xf32>
    %29 = vector.extract_strided_slice %4 {offsets = [0, 8], sizes = [8, 8], strides = [1, 1]} : vector<8x32xf32> to vector<8x8xf32>
    %30 = vector.extract_strided_slice %5 {offsets = [0, 8], sizes = [8, 8], strides = [1, 1]} : vector<8x32xf32> to vector<8x8xf32>
    %cst_10 = arith.constant dense<0.000000e+00> : vector<8x8xf32>
    %31 = tpu.matmul %28, %29, %cst_10 {dimension_numbers = #tpu.dot_dimension_numbers<[1], [1], [0], [0], [0, 0, 1, 0], [], []>} : vector<8x8xf32>, vector<8x8xf32>, vector<8x8xf32> -> vector<8x8xf32>
    %cst_11 = arith.constant 0.353553385 : f32
    %32 = vector.broadcast %cst_11 : f32 to vector<8x8xf32>
    %33 = arith.mulf %31, %32 : vector<8x8xf32>
    %34 = arith.addf %33, %9 : vector<8x8xf32>
    %cst_12 = arith.constant dense<0xFF800000> : vector<8xf32>
    %35 = vector.multi_reduction <maximumf>, %34, %cst_12 [1] : vector<8x8xf32> to vector<8xf32>
    %36 = vector.shape_cast %35 : vector<8xf32> to vector<8x1xf32>
    %37 = vector.broadcast %36 : vector<8x1xf32> to vector<8x8xf32>
    %38 = arith.subf %34, %37 : vector<8x8xf32>
    %39 = math.exp %38 : vector<8x8xf32>
    %cst_13 = arith.constant dense<0.000000e+00> : vector<8xf32>
    %40 = vector.multi_reduction <add>, %39, %cst_13 [1] : vector<8x8xf32> to vector<8xf32>
    %41 = vector.shape_cast %40 : vector<8xf32> to vector<8x1xf32>
    %42 = tpu.reciprocal %41 {approx = true} : vector<8x1xf32> -> vector<8x1xf32>
    %43 = vector.broadcast %42 : vector<8x1xf32> to vector<8x8xf32>
    %44 = arith.mulf %39, %43 : vector<8x8xf32>
    %cst_14 = arith.constant dense<0.000000e+00> : vector<8x8xf32>
    %45 = tpu.matmul %44, %30, %cst_14 {dimension_numbers = #tpu.dot_dimension_numbers<[1], [0], [0], [1], [0, 0, 1, 1], [], []>} : vector<8x8xf32>, vector<8x8xf32>, vector<8x8xf32> -> vector<8x8xf32>
    %46 = vector.extract_strided_slice %1 {offsets = [0, 16], sizes = [8, 8], strides = [1, 1]} : vector<8x32xf32> to vector<8x8xf32>
    %47 = vector.extract_strided_slice %4 {offsets = [0, 16], sizes = [8, 8], strides = [1, 1]} : vector<8x32xf32> to vector<8x8xf32>
    %48 = vector.extract_strided_slice %5 {offsets = [0, 16], sizes = [8, 8], strides = [1, 1]} : vector<8x32xf32> to vector<8x8xf32>
    %cst_15 = arith.constant dense<0.000000e+00> : vector<8x8xf32>
    %49 = tpu.matmul %46, %47, %cst_15 {dimension_numbers = #tpu.dot_dimension_numbers<[1], [1], [0], [0], [0, 0, 1, 0], [], []>} : vector<8x8xf32>, vector<8x8xf32>, vector<8x8xf32> -> vector<8x8xf32>
    %cst_16 = arith.constant 0.353553385 : f32
    %50 = vector.broadcast %cst_16 : f32 to vector<8x8xf32>
    %51 = arith.mulf %49, %50 : vector<8x8xf32>
    %52 = arith.addf %51, %9 : vector<8x8xf32>
    %cst_17 = arith.constant dense<0xFF800000> : vector<8xf32>
    %53 = vector.multi_reduction <maximumf>, %52, %cst_17 [1] : vector<8x8xf32> to vector<8xf32>
    %54 = vector.shape_cast %53 : vector<8xf32> to vector<8x1xf32>
    %55 = vector.broadcast %54 : vector<8x1xf32> to vector<8x8xf32>
    %56 = arith.subf %52, %55 : vector<8x8xf32>
    %57 = math.exp %56 : vector<8x8xf32>
    %cst_18 = arith.constant dense<0.000000e+00> : vector<8xf32>
    %58 = vector.multi_reduction <add>, %57, %cst_18 [1] : vector<8x8xf32> to vector<8xf32>
    %59 = vector.shape_cast %58 : vector<8xf32> to vector<8x1xf32>
    %60 = tpu.reciprocal %59 {approx = true} : vector<8x1xf32> -> vector<8x1xf32>
    %61 = vector.broadcast %60 : vector<8x1xf32> to vector<8x8xf32>
    %62 = arith.mulf %57, %61 : vector<8x8xf32>
    %cst_19 = arith.constant dense<0.000000e+00> : vector<8x8xf32>
    %63 = tpu.matmul %62, %48, %cst_19 {dimension_numbers = #tpu.dot_dimension_numbers<[1], [0], [0], [1], [0, 0, 1, 1], [], []>} : vector<8x8xf32>, vector<8x8xf32>, vector<8x8xf32> -> vector<8x8xf32>
    %64 = vector.extract_strided_slice %1 {offsets = [0, 24], sizes = [8, 8], strides = [1, 1]} : vector<8x32xf32> to vector<8x8xf32>
    %65 = vector.extract_strided_slice %4 {offsets = [0, 24], sizes = [8, 8], strides = [1, 1]} : vector<8x32xf32> to vector<8x8xf32>
    %66 = vector.extract_strided_slice %5 {offsets = [0, 24], sizes = [8, 8], strides = [1, 1]} : vector<8x32xf32> to vector<8x8xf32>
    %cst_20 = arith.constant dense<0.000000e+00> : vector<8x8xf32>
    %67 = tpu.matmul %64, %65, %cst_20 {dimension_numbers = #tpu.dot_dimension_numbers<[1], [1], [0], [0], [0, 0, 1, 0], [], []>} : vector<8x8xf32>, vector<8x8xf32>, vector<8x8xf32> -> vector<8x8xf32>
    %cst_21 = arith.constant 0.353553385 : f32
    %68 = vector.broadcast %cst_21 : f32 to vector<8x8xf32>
    %69 = arith.mulf %67, %68 : vector<8x8xf32>
    %70 = arith.addf %69, %9 : vector<8x8xf32>
    %cst_22 = arith.constant dense<0xFF800000> : vector<8xf32>
    %71 = vector.multi_reduction <maximumf>, %70, %cst_22 [1] : vector<8x8xf32> to vector<8xf32>
    %72 = vector.shape_cast %71 : vector<8xf32> to vector<8x1xf32>
    %73 = vector.broadcast %72 : vector<8x1xf32> to vector<8x8xf32>
    %74 = arith.subf %70, %73 : vector<8x8xf32>
    %75 = math.exp %74 : vector<8x8xf32>
    %cst_23 = arith.constant dense<0.000000e+00> : vector<8xf32>
    %76 = vector.multi_reduction <add>, %75, %cst_23 [1] : vector<8x8xf32> to vector<8xf32>
    %77 = vector.shape_cast %76 : vector<8xf32> to vector<8x1xf32>
    %78 = tpu.reciprocal %77 {approx = true} : vector<8x1xf32> -> vector<8x1xf32>
    %79 = vector.broadcast %78 : vector<8x1xf32> to vector<8x8xf32>
    %80 = arith.mulf %75, %79 : vector<8x8xf32>
    %cst_24 = arith.constant dense<0.000000e+00> : vector<8x8xf32>
    %81 = tpu.matmul %80, %66, %cst_24 {dimension_numbers = #tpu.dot_dimension_numbers<[1], [0], [0], [1], [0, 0, 1, 1], [], []>} : vector<8x8xf32>, vector<8x8xf32>, vector<8x8xf32> -> vector<8x8xf32>
    %82 = tpu.concatenate %27, %45, %63, %81 in 1 : vector<8x8xf32>, vector<8x8xf32>, vector<8x8xf32>, vector<8x8xf32> -> vector<8x32xf32>
    %c0_25 = arith.constant 0 : index
    %c0_26 = arith.constant 0 : index
    %c0_27 = arith.constant 0 : index
    %83 = vector.load %arg4[%c0_25, %c0_26, %c0_27] : memref<1x8x32xf32, #tpu.memory_space<vmem>>, vector<1x8x32xf32>
    %84 = vector.shape_cast %83 : vector<1x8x32xf32> to vector<8x32xf32>
    %85 = vector.shape_cast %82 : vector<8x32xf32> to vector<1x8x32xf32>
    tpu.vector_store %arg4[%c0_25, %c0_26, %c0_27], %85 {strides = array<i32>} : memref<1x8x32xf32, #tpu.memory_space<vmem>>, vector<1x8x32xf32>,
    return
  }
  func.func @transform_0(%arg0: i32) -> (i32, i32, i32) {
    %c0_i32 = arith.constant 0 : i32
    %c0_i32_0 = arith.constant 0 : i32
    %c0_i32_1 = arith.constant 0 : i32
    return %arg0, %c0_i32, %c0_i32_0 : i32, i32, i32
  }
  func.func @transform_1(%arg0: i32) -> (i32, i32, i32) {
    %c0_i32 = arith.constant 0 : i32
    %c0_i32_0 = arith.constant 0 : i32
    %c0_i32_1 = arith.constant 0 : i32
    return %arg0, %c0_i32, %c0_i32_0 : i32, i32, i32
  }
  func.func @transform_2(%arg0: i32) -> (i32, i32) {
    %c0_i32 = arith.constant 0 : i32
    %c0_i32_0 = arith.constant 0 : i32
    %c0_i32_1 = arith.constant 0 : i32
    return %c0_i32, %c0_i32_0 : i32, i32
  }
  func.func @transform_3(%arg0: i32) -> (i32, i32, i32) {
    %c0_i32 = arith.constant 0 : i32
    %c0_i32_0 = arith.constant 0 : i32
    %c0_i32_1 = arith.constant 0 : i32
    return %arg0, %c0_i32, %c0_i32_0 : i32, i32, i32
  }
}

module attributes {stable_mosaic.version = 11 : i64} {
  func.func @_linear_kernel(%arg0: i32, %arg1: i32, %arg2: i32, %arg3: memref<16x32xf32, #tpu.memory_space<vmem>>, %arg4: memref<32x50xf32, #tpu.memory_space<vmem>>, %arg5: memref<1x50xf32, #tpu.memory_space<vmem>>, %arg6: memref<16x50xf32, #tpu.memory_space<vmem>>, %arg7: memref<16x50xf32, #tpu.memory_space<vmem>>) attributes {dimension_semantics = [#tpu.dimension_semantics<parallel>, #tpu.dimension_semantics<parallel>, #tpu.dimension_semantics<arbitrary>], iteration_bounds = array<i64: 1, 1, 1>, scalar_prefetch = 0 : i64, scratch_operands = 1 : i64, tpu.core_type = #tpu.core_type<tc>, window_params = [{transform_indices = @transform_0, window_bounds = array<i64: 16, 32>}, {transform_indices = @transform_1, window_bounds = array<i64: 32, 50>}, {transform_indices = @transform_2, window_bounds = array<i64: 1, 50>}, {transform_indices = @transform_3, window_bounds = array<i64: 16, 50>}]} {
    %c0_i32 = arith.constant 0 : i32
    %0 = arith.cmpi eq, %arg2, %c0_i32 : i32
    %1 = arith.extui %0 : i1 to i32
    %c0_i32_0 = arith.constant 0 : i32
    %2 = arith.cmpi ne, %1, %c0_i32_0 : i32
    scf.if %2 {
      %cst_10 = arith.constant 0.000000e+00 : f32
      %12 = vector.broadcast %cst_10 : f32 to vector<16x50xf32>
      %c0_11 = arith.constant 0 : index
      %c0_12 = arith.constant 0 : index
      %13 = vector.load %arg7[%c0_11, %c0_12] : memref<16x50xf32, #tpu.memory_space<vmem>>, vector<16x50xf32>
      tpu.vector_store %arg7[%c0_11, %c0_12], %12 {strides = array<i32>} : memref<16x50xf32, #tpu.memory_space<vmem>>, vector<16x50xf32>,
    } else {
    }
    %c0 = arith.constant 0 : index
    %c0_1 = arith.constant 0 : index
    %3 = vector.load %arg7[%c0, %c0_1] : memref<16x50xf32, #tpu.memory_space<vmem>>, vector<16x50xf32>
    %c0_2 = arith.constant 0 : index
    %c0_3 = arith.constant 0 : index
    %4 = vector.load %arg3[%c0_2, %c0_3] : memref<16x32xf32, #tpu.memory_space<vmem>>, vector<16x32xf32>
    %c0_4 = arith.constant 0 : index
    %c0_5 = arith.constant 0 : index
    %5 = vector.load %arg4[%c0_4, %c0_5] : memref<32x50xf32, #tpu.memory_space<vmem>>, vector<32x50xf32>
    %cst = arith.constant dense<0.000000e+00> : vector<16x50xf32>
    %6 = tpu.matmul %4, %5, %cst {dimension_numbers = #tpu.dot_dimension_numbers<[1], [0], [0], [1], [0, 0, 1, 1], [], []>} : vector<16x32xf32>, vector<32x50xf32>, vector<16x50xf32> -> vector<16x50xf32>
    %7 = arith.addf %3, %6 : vector<16x50xf32>
    %c0_6 = arith.constant 0 : index
    %c0_7 = arith.constant 0 : index
    %8 = vector.load %arg7[%c0_6, %c0_7] : memref<16x50xf32, #tpu.memory_space<vmem>>, vector<16x50xf32>
    tpu.vector_store %arg7[%c0_6, %c0_7], %7 {strides = array<i32>} : memref<16x50xf32, #tpu.memory_space<vmem>>, vector<16x50xf32>,
    %c0_i32_8 = arith.constant 0 : i32
    %9 = arith.cmpi eq, %arg2, %c0_i32_8 : i32
    %10 = arith.extui %9 : i1 to i32
    %c0_i32_9 = arith.constant 0 : i32
    %11 = arith.cmpi ne, %10, %c0_i32_9 : i32
    scf.if %11 {
      %c0_10 = arith.constant 0 : index
      %c0_11 = arith.constant 0 : index
      %12 = vector.load %arg7[%c0_10, %c0_11] : memref<16x50xf32, #tpu.memory_space<vmem>>, vector<16x50xf32>
      %c0_12 = arith.constant 0 : index
      %c0_13 = arith.constant 0 : index
      %13 = vector.load %arg5[%c0_12, %c0_13] : memref<1x50xf32, #tpu.memory_space<vmem>>, vector<1x50xf32>
      %14 = vector.broadcast %13 : vector<1x50xf32> to vector<16x50xf32>
      %15 = arith.addf %12, %14 : vector<16x50xf32>
      %c0_14 = arith.constant 0 : index
      %c0_15 = arith.constant 0 : index
      %16 = vector.load %arg6[%c0_14, %c0_15] : memref<16x50xf32, #tpu.memory_space<vmem>>, vector<16x50xf32>
      tpu.vector_store %arg6[%c0_14, %c0_15], %15 {strides = array<i32>} : memref<16x50xf32, #tpu.memory_space<vmem>>, vector<16x50xf32>,
    } else {
    }
    return
  }
  func.func @transform_0(%arg0: i32, %arg1: i32, %arg2: i32) -> (i32, i32) {
    %c0_i32 = arith.constant 0 : i32
    return %arg0, %arg2 : i32, i32
  }
  func.func @transform_1(%arg0: i32, %arg1: i32, %arg2: i32) -> (i32, i32) {
    %c0_i32 = arith.constant 0 : i32
    return %arg2, %arg1 : i32, i32
  }
  func.func @transform_2(%arg0: i32, %arg1: i32, %arg2: i32) -> (i32, i32) {
    %c0_i32 = arith.constant 0 : i32
    %c0_i32_0 = arith.constant 0 : i32
    return %c0_i32, %arg1 : i32, i32
  }
  func.func @transform_3(%arg0: i32, %arg1: i32, %arg2: i32) -> (i32, i32) {
    %c0_i32 = arith.constant 0 : i32
    return %arg0, %arg1 : i32, i32
  }
}

</mosaic_0001>

<bundles_post_ra>
// kernel: transformer_autoencoder_forward.35
= control target key start
LH: loop header
LB: loop body
LE: loop exit
PB: predicated region body
PF: predicated region fallthrough
CT: control target
= control target key end

     0   :  { %vm29_vm0 = vcmask 261120   ;;  %vm18_vm1 = vcmask 785408   ;;  %v157_v2 = vmov 0.0   ;;  %s213_s1 = inlined_call_operand.vmem [shape: f32[32,96], index: 1, kind: input, shape index: {}]   ;;  %s214_s0 = inlined_call_operand.vmem [shape: f32[16,32], index: 0, kind: input, shape index: {}]   ;;  %s215_s2 = inlined_call_operand.vmem [shape: f32[1,96], index: 2, kind: input, shape index: {}]   ;;  %s216_s3 = inlined_call_operand.vmem [shape: f32[16,96], index: 3, kind: output, shape index: {}]  }
   0x1   :  { %v28_v0 = vld [vmem:[%s213_s1 + $0x18] sm:$0xff]  ;;  %v27_v1 = vld [vmem:[%s213_s1 + $0x10] sm:$0xff]  ;;  %20 = vst.msk [vmem:[#allocation2 + $0x8] sm:$0xff] %vm18_vm1, %v157_v2  ;;  %19 = vst.msk [vmem:[#allocation2] sm:$0xff] %vm18_vm1, %v157_v2 }
   0x2   :  { %145 = vmatprep.subr.mxu0 %v28_v0  ;;  %v23_v3 = vld [vmem:[%s214_s0] sm:$0xff]  ;;  %v26_v4 = vld [vmem:[%s213_s1 + $0x8] sm:$0xff] }
   0x3   :  { %146 = vmatpush3.msra.mxu0 %v28_v0  ;;  %153 = vmatprep.mubr.msk.f32.mxu0 %vm29_vm0, %v23_v3  ;;  %v25_v5 = vld [vmem:[%s213_s1] sm:$0xff]  ;;  %v24_v6 = vld [vmem:[%s214_s0 + $0x8] sm:$0xff] }
   0x4   :  { %147 = vmatprep.subr.mxu0 %v27_v1  ;;  %v138_v13 = vld [vmem:[%s215_s2] ss:$0 sm:$0xff] }
   0x5   :  { %148 = vmatpush3.msra.mxu0 %v27_v1 }
   0x6   :  { %149 = vmatprep.subr.mxu0 %v26_v4 }
   0x7   :  { %150 = vmatpush3.msra.mxu0 %v26_v4 }
   0x8   :  { %151 = vmatprep.subr.mxu0 %v25_v5  ;;  %v22_v7 = vld [vmem:[#allocation2 + $0x8] sm:$0xff]  ;;  %v21_v9 = vld [vmem:[#allocation2] sm:$0xff] }
   0x9   :  { %152 = vmatpush3.msra.mxu0 %v25_v5 }
   0xa   :  { %154 = vmatmul.mubr.msk.f32.vlgmr.msra.gmra.mxu0 %vm29_vm0, %v24_v6 }
  0xca   :  { %v155_v8 = vpop.f32.mrf.mxu0 }
  0xcb   :  { %v112_v10 = vadd.f32 %v155_v8, %v22_v7 }
  0xcc   :  { %v102_v11 = vpop.f32.mrf.mxu0 }
  0xcd   :  { %115 = vst.msk [vmem:[#allocation2 + $0x8] sm:$0xff] %vm18_vm1, %v112_v10  ;;  %v111_v12 = vadd.f32 %v102_v11, %v21_v9 }
  0xcf   :  { %114 = vst.msk [vmem:[#allocation2] sm:$0xff] %vm18_vm1, %v111_v12 }
  0xd4   :  { %v120_v14 = vld [vmem:[#allocation2 + $0x8] sm:$0xff] }
  0xd5   :  { %v129_v15 = vadd.f32 %v138_v13, %v120_v14 }
  0xd6   :  { %v119_v16 = vld [vmem:[#allocation2] sm:$0xff] }
  0xd7   :  { %131 = vst.msk [vmem:[%s216_s3 + $0x8] sm:$0xff] %vm18_vm1, %v129_v15  ;;  %v128_v17 = vadd.f32 %v138_v13, %v119_v16 }
  0xd9   :  { %130 = vst.msk [vmem:[%s216_s3] sm:$0xff] %vm18_vm1, %v128_v17 }

// kernel: transformer_autoencoder_forward.38
= control target key start
LH: loop header
LB: loop body
LE: loop exit
PB: predicated region body
PF: predicated region fallthrough
CT: control target
= control target key end

     0   :  { %vm23_vm0 = vcmask 261120   ;;  %s136_s0 = inlined_call_operand.vmem [shape: f32[16,32], index: 0, kind: input, shape index: {}]   ;;  %s137_s1 = inlined_call_operand.vmem [shape: f32[16,32], index: 1, kind: input, shape index: {}]   ;;  %s138_s2 = inlined_call_operand.vmem [shape: f32[1,32], index: 2, kind: input, shape index: {}]   ;;  %s139_s3 = inlined_call_operand.vmem [shape: f32[1,32], index: 3, kind: input, shape index: {}]   ;;  %s140_s4 = inlined_call_operand.vmem [shape: f32[16,32], index: 4, kind: output, shape index: {}]  }
   0x1   :  { %v17_v0 = vld [vmem:[%s136_s0] sm:$0xff]  ;;  %v18_v2 = vld [vmem:[%s136_s0 + $0x8] sm:$0xff] }
   0x2   :  { %v19_v1 = vld [vmem:[%s137_s1] sm:$0xff]  ;;  %v20_v4 = vld [vmem:[%s137_s1 + $0x8] sm:$0xff] }
   0x3   :  { %v21_v3 = vadd.f32 %v19_v1, %v17_v0  ;;  %v22_v5 = vadd.f32 %v20_v4, %v18_v2  ;;  %v75_v25 = vld [vmem:[%s138_s2] ss:$0 sm:$0xff] }
   0x4   :  { %v76_v27 = vld [vmem:[%s139_s3] ss:$0 sm:$0xff] }
   0x5   :  { %v24_v6 = vsel %vm23_vm0, %v21_v3, 0.0  ;;  %v27_v7 = vsel %vm23_vm0, %v22_v5, 0.0 }
   0x6   :  { %25 = vadd.xlane.f32.xlu0 %v24_v6 }
   0xa   :  { %28 = vadd.xlane.f32.xlu0 %v27_v7 }
  0x8f   :  { %v26_v8 = vpop.xlane.xlu0 %25 }
  0x90   :  { %v31_v9 = vmul.f32 0.03125, %v26_v8 }
  0x92   :  { %v33_v10 = vsub.f32 %v21_v3, %v31_v9 }
  0x93   :  { %v29_v11 = vpop.xlane.xlu0 %28 }
  0x94   :  { %v32_v12 = vmul.f32 0.03125, %v29_v11  ;;  %v35_v13 = vmul.f32 %v33_v10, %v33_v10 }
  0x96   :  { %v34_v14 = vsub.f32 %v22_v5, %v32_v12  ;;  %v37_v15 = vsel %vm23_vm0, %v35_v13, 0.0 }
  0x97   :  { %38 = vadd.xlane.f32.xlu1 %v37_v15 }
  0x98   :  { %v36_v16 = vmul.f32 %v34_v14, %v34_v14 }
  0x9a   :  { %v40_v17 = vsel %vm23_vm0, %v36_v16, 0.0 }
  0x9b   :  { %41 = vadd.xlane.f32.xlu1 %v40_v17 }
 0x120   :  { %v39_v18 = vpop.xlane.xlu1 %38 }
 0x121   :  { %v43_v19 = vmul.f32 0.03125, %v39_v18 }
 0x123   :  { %v45_v20 = vadd.f32 1e-05, %v43_v19 }
 0x124   :  { %v42_v21 = vpop.xlane.xlu1 %41 }
 0x125   :  { %77 = vrsqrt.f32 %v45_v20  ;;  %v44_v22 = vmul.f32 0.03125, %v42_v21 }
 0x127   :  { %v46_v23 = vadd.f32 1e-05, %v44_v22 }
 0x129   :  { %79 = vrsqrt.f32 %v46_v23 }
 0x132   :  { %v78_v24 = vpop.eup %77 }
 0x133   :  { %v49_v26 = vmul.f32 %v78_v24, %v33_v10 }
 0x135   :  { %v58_v28 = vmul.f32 %v75_v25, %v49_v26 }
 0x136   :  { %v80_v29 = vpop.eup %79 }
 0x137   :  { %v67_v30 = vadd.f32 %v76_v27, %v58_v28  ;;  %v50_v31 = vmul.f32 %v80_v29, %v34_v14 }
 0x139   :  { %69 = vst.msk [vmem:[%s140_s4] sm:$0xff] %vm23_vm0, %v67_v30  ;;  %v59_v32 = vmul.f32 %v75_v25, %v50_v31 }
 0x13b   :  { %v68_v33 = vadd.f32 %v76_v27, %v59_v32 }
 0x13d   :  { %70 = vst.msk [vmem:[%s140_s4 + $0x8] sm:$0xff] %vm23_vm0, %v68_v33 }

// kernel: transformer_autoencoder_forward.37
= control target key start
LH: loop header
LB: loop body
LE: loop exit
PB: predicated region body
PF: predicated region fallthrough
CT: control target
= control target key end

     0   :  { %vm18_vm0 = vcmask 261120   ;;  %v156_v2 = vmov 0.0   ;;  %s212_s1 = inlined_call_operand.vmem [shape: f32[32,32], index: 1, kind: input, shape index: {}]   ;;  %s213_s0 = inlined_call_operand.vmem [shape: f32[16,32], index: 0, kind: input, shape index: {}]   ;;  %s214_s2 = inlined_call_operand.vmem [shape: f32[1,32], index: 2, kind: input, shape index: {}]   ;;  %s215_s3 = inlined_call_operand.vmem [shape: f32[16,32], index: 3, kind: output, shape index: {}]  }
   0x1   :  { %v28_v0 = vld [vmem:[%s212_s1 + $0x18] sm:$0xff]  ;;  %v27_v1 = vld [vmem:[%s212_s1 + $0x10] sm:$0xff]  ;;  %20 = vst.msk [vmem:[#allocation2 + $0x8] sm:$0xff] %vm18_vm0, %v156_v2  ;;  %19 = vst.msk [vmem:[#allocation2] sm:$0xff] %vm18_vm0, %v156_v2 }
   0x2   :  { %144 = vmatprep.subr.mxu0 %v28_v0  ;;  %v23_v3 = vld [vmem:[%s213_s0] sm:$0xff]  ;;  %v26_v4 = vld [vmem:[%s212_s1 + $0x8] sm:$0xff] }
   0x3   :  { %145 = vmatpush3.msra.mxu0 %v28_v0  ;;  %152 = vmatprep.mubr.msk.f32.mxu0 %vm18_vm0, %v23_v3  ;;  %v25_v5 = vld [vmem:[%s212_s1] sm:$0xff]  ;;  %v24_v6 = vld [vmem:[%s213_s0 + $0x8] sm:$0xff] }
   0x4   :  { %146 = vmatprep.subr.mxu0 %v27_v1  ;;  %v137_v13 = vld [vmem:[%s214_s2] ss:$0 sm:$0xff] }
   0x5   :  { %147 = vmatpush3.msra.mxu0 %v27_v1 }
   0x6   :  { %148 = vmatprep.subr.mxu0 %v26_v4 }
   0x7   :  { %149 = vmatpush3.msra.mxu0 %v26_v4 }
   0x8   :  { %150 = vmatprep.subr.mxu0 %v25_v5  ;;  %v22_v7 = vld [vmem:[#allocation2 + $0x8] sm:$0xff]  ;;  %v21_v9 = vld [vmem:[#allocation2] sm:$0xff] }
   0x9   :  { %151 = vmatpush3.msra.mxu0 %v25_v5 }
   0xa   :  { %153 = vmatmul.mubr.msk.f32.vlgmr.msra.gmra.mxu0 %vm18_vm0, %v24_v6 }
  0xca   :  { %v154_v8 = vpop.f32.mrf.mxu0 }
  0xcb   :  { %v112_v10 = vadd.f32 %v154_v8, %v22_v7 }
  0xcc   :  { %v102_v11 = vpop.f32.mrf.mxu0 }
  0xcd   :  { %114 = vst.msk [vmem:[#allocation2 + $0x8] sm:$0xff] %vm18_vm0, %v112_v10  ;;  %v111_v12 = vadd.f32 %v102_v11, %v21_v9 }
  0xcf   :  { %113 = vst.msk [vmem:[#allocation2] sm:$0xff] %vm18_vm0, %v111_v12 }
  0xd4   :  { %v119_v14 = vld [vmem:[#allocation2 + $0x8] sm:$0xff] }
  0xd5   :  { %v128_v15 = vadd.f32 %v137_v13, %v119_v14 }
  0xd6   :  { %v118_v16 = vld [vmem:[#allocation2] sm:$0xff] }
  0xd7   :  { %130 = vst.msk [vmem:[%s215_s3 + $0x8] sm:$0xff] %vm18_vm0, %v128_v15  ;;  %v127_v17 = vadd.f32 %v137_v13, %v118_v16 }
  0xd9   :  { %129 = vst.msk [vmem:[%s215_s3] sm:$0xff] %vm18_vm0, %v127_v17 }

// kernel: transformer_autoencoder_forward.36
= control target key start
LH: loop header
LB: loop body
LE: loop exit
PB: predicated region body
PF: predicated region fallthrough
CT: control target
= control target key end

     0   :  { %s1044_s9 = smov 0   ;;  %s1138_s0 = inlined_call_operand.vmem [shape: f32[2,8,96], index: 0, kind: input, shape index: {}]   ;;  %s1139_s1 = inlined_call_operand.vmem [shape: f32[2,8], index: 1, kind: input, shape index: {}]   ;;  %s1140_s2 = inlined_call_operand.vmem [shape: f32[2,8,32], index: 2, kind: output, shape index: {}]  }
   0x1 LB: > { %s1050_s10 = sadd.s32 4294967295, %s1011_s9   ;;  %p891_p0 = scmp.ge.s32.totalorder %s1011_s9, 1  ;;  %s1011_s9 = sphi %s1044_s9, %s12_s9  }
   0x2   : > { %p111_p1 = scmp.lt.s32.totalorder %s1011_s9, 3 }
   0x4   : > { %p112_p2 = pnand %p891_p0, %p111_p1 }
   0x5   : > { %p131_p3 = scmp.lt.s32.totalorder (!%p112_p2), %s1050_s10, 1  ;;  %s1015_s16 = smov (!%p112_p2), 96  }
   0x6   : > { %115 = sbr.rel (%p112_p2) target bundleno = 1474 (0x5c2), region = 28  ;;  %s1016_s17 = smov (!%p112_p2), 64  }
   0x7   : > { %s1017_s18 = smov (!%p112_p2), 88   ;;  %s1018_s19 = smov (!%p112_p2), 120  }
   0x8   : > { %s1019_s20 = smov (!%p112_p2), 80   ;;  %s140_s23 = scalar_lea.vmem (!%p112_p2), %s1139_s1, %s1050_s10 }
   0x9   : > { %s1020_s24 = smov (!%p112_p2), 72   ;;  %s1021_s25 = smov (!%p112_p2), 112  }
   0xa   : > { %s1022_s26 = smov (!%p112_p2), 104   ;;  %s1023_s27 = smov (!%p112_p2), 56  }
   0xb   : > { %v1013_v0 = vmov 0.0   ;;  %vm1014_vm0 = vmmov 0   ;;  %s1059_s11 = scalar_select %p131_p3, %s1050_s10, 1  ;;  %vm149_vm1 = vcmask 64512   ;;  %v894_v4 = vld [vmem:[%s140_s23] ss:$0 sm:$0xff] }
   0xc   : > { %925 = vmatprep.subr.mxu0 %v1013_v0  ;;  %927 = vmatprep.mubr.msk.f32.mxu0 %vm1014_vm0, %v1013_v0  ;;  %s1024_s28 = smov 40   ;;  %s1025_s29 = smov 48   ;;  %vm827_vm2 = vcmask 130048   ;;  %vm829_vm3 = vcmask 195584   ;;  %vm831_vm4 = vcmask 261120  }
   0xd   : > { %930 = vmatprep.subr.mxu1 %v1013_v0  ;;  %932 = vmatprep.mubr.msk.f32.mxu1 %vm1014_vm0, %v1013_v0  ;;  %s892_s12 = sshll.u32 %s1059_s11, 3  ;;  %s1026_s30 = smov 8  }
   0xe   : > { %s134_s15 = scalar_lea.vmem %s1138_s0, %s892_s12  ;;  %s1027_s3 = smov 16  }
   0xf   : > { %v1070_v1 = vld [vmem:[%s134_s15] sm:$0xff]  ;;  %s1028_s4 = smov 24   ;;  %s138_s7 = scalar_lea.vmem %s1140_s2, %s892_s12 }
  0x10   : > { %147 = vrot.lane.b32.xlu0 %v1070_v1, %s1015_s16  ;;  %237 = vrot.lane.b32.xlu1 %v1070_v1, %s1016_s17 }
  0x14   : > { %315 = vrot.lane.b32.xlu1 %v1070_v1, %s1017_s18 }
  0x18   : > { %313 = vrot.lane.b32.xlu1 %v1070_v1, %s1018_s19 }
  0x1c   : > { %482 = vrot.lane.b32.xlu1 %v1070_v1, %s1019_s20 }
  0x82   : > { %v148_v2 = vpop.permute.xlu0 %147  ;;  %v238_v9 = vpop.permute.xlu1 %237 }
  0x83   : > { %926 = vmatpush3.xpose.msk.msra.mxu0 %vm149_vm1, %v148_v2  ;;  %931 = vmatpush3.msra.mxu1 %v238_v9 }
  0x84   : > { %940 = vmatprep.subr.mxu0 %v1013_v0  ;;  %935 = vmatprep.subr.mxu1 %v1013_v0 }
  0x86   : > { %928 = vmatmul.mubr.msk.f32.vlgmr.msra.gmra.mxu0 %vm149_vm1, %v1070_v1  ;;  %v316_v15 = vpop.permute.xlu1 %315 }
  0x87   : > { %942 = vmatprep.mubr.msk.f32.mxu0 %vm1014_vm0, %v1013_v0 }
  0x8a   : > { %v314_v16 = vpop.permute.xlu1 %313 }
  0x8e   : > { %v483_v17 = vpop.permute.xlu1 %482 }
 0x146   : > { %v220_v3 = vpop.f32.mrf.mxu0 }
 0x147   : > { %v224_v5 = vmul.f32 0.35355338, %v220_v3 }
 0x148   : > { %v929_v6 = vpop.f32.mrf.mxu0 }
 0x149   : > { %v225_v7 = vadd.f32 %v894_v4, %v224_v5 }
 0x14b   : > { %v226_v8 = vsel %vm149_vm1, %v225_v7, -inf }
 0x14c   : > { %227 = vmax.xlane.f32.xlu0 %v226_v8 }
 0x162   : > { %649 = vrot.lane.b32.xlu0 %v1070_v1, %s1020_s24 }
 0x1d5   : > { %v228_v10 = vpop.xlane.xlu0 %227 }
 0x1d6   : > { %v229_v11 = vsub.f32 %v225_v7, %v228_v10 }
 0x1d8   : > { %v230_v12 = vmul.f32 1.442695, %v229_v11 }
 0x1d9   : > { %v650_v22 = vpop.permute.xlu0 %649 }
 0x1da   : > { %989 = vpow2.f32 %v230_v12 }
 0x1e7   : > { %v990_v13 = vpop.eup %989 }
 0x1e8   : > { %v232_v14 = vsel %vm149_vm1, %v990_v13, 0.0 }
 0x1e9   : > { %233 = vadd.xlane.f32.xlu1 %v232_v14 }
 0x1fa   : > { %480 = vrot.lane.b32.xlu1 %v1070_v1, %s1021_s25 }
 0x1fe   : > { %647 = vrot.lane.b32.xlu1 %v1070_v1, %s1022_s26 }
 0x272   : > { %v234_v18 = vpop.xlane.xlu1 %233 }
 0x273   : > { %991 = vrcp.f32 %v234_v18 }
 0x276   : > { %v481_v21 = vpop.permute.xlu1 %480 }
 0x27a   : > { %v648_v23 = vpop.permute.xlu1 %647 }
 0x280   : > { %v992_v19 = vpop.eup %991 }
 0x281   : > { %v236_v20 = vmul.f32 %v992_v19, %v990_v13 }
 0x283   : > { %933 = vmatmul.mubr.msk.f32.vlgmr.msra.gmra.mxu1 %vm149_vm1, %v236_v20 }
 0x284   : > { %936 = vmatpush3.xpose.msk.msra.mxu1 %vm149_vm1, %v316_v15  ;;  %937 = vmatprep.mubr.msk.f32.mxu1 %vm1014_vm0, %v1013_v0 }
 0x285   : > { %945 = vmatprep.subr.mxu1 %v1013_v0 }
 0x287   : > { %938 = vmatmul.mubr.msk.f32.vlgmr.msra.gmra.mxu1 %vm149_vm1, %v314_v16 }
 0x288   : > { %946 = vmatpush3.xpose.msk.msra.mxu1 %vm149_vm1, %v483_v17  ;;  %947 = vmatprep.mubr.msk.f32.mxu1 %vm1014_vm0, %v1013_v0 }
 0x289   : > { %955 = vmatprep.subr.mxu1 %v1013_v0 }
 0x28b   : > { %948 = vmatmul.mubr.msk.f32.vlgmr.msra.gmra.mxu1 %vm149_vm1, %v481_v21 }
 0x28c   : > { %956 = vmatpush3.xpose.msk.msra.mxu1 %vm149_vm1, %v650_v22  ;;  %957 = vmatprep.mubr.msk.f32.mxu1 %vm1014_vm0, %v1013_v0 }
 0x28f   : > { %958 = vmatmul.mubr.msk.f32.vlgmr.msra.gmra.mxu1 %vm149_vm1, %v648_v23 }
 0x343   : > { %v1108_v24 = vpop.f32.mrf.mxu1 }
 0x345   : > { %v934_v25 = vpop.f32.mrf.mxu1 }
 0x347   : > { %v387_v26 = vpop.f32.mrf.mxu1 }
 0x348   : > { %v391_v27 = vmul.f32 0.35355338, %v387_v26 }
 0x349   : > { %v939_v28 = vpop.f32.mrf.mxu1 }
 0x34a   : > { %v392_v29 = vadd.f32 %v894_v4, %v391_v27 }
 0x34b   : > { %v554_v30 = vpop.f32.mrf.mxu1 }
 0x34c   : > { %v558_v31 = vmul.f32 0.35355338, %v554_v30  ;;  %v393_v32 = vsel %vm149_vm1, %v392_v29, -inf }
 0x34d   : > { %394 = vmax.xlane.f32.xlu1 %v393_v32  ;;  %v949_v33 = vpop.f32.mrf.mxu1 }
 0x34e   : > { %v559_v34 = vadd.f32 %v894_v4, %v558_v31 }
 0x34f   : > { %v721_v35 = vpop.f32.mrf.mxu1 }
 0x350   : > { %v725_v36 = vmul.f32 0.35355338, %v721_v35  ;;  %v560_v37 = vsel %vm149_vm1, %v559_v34, -inf }
 0x351   : > { %561 = vmax.xlane.f32.xlu0 %v560_v37  ;;  %v959_v38 = vpop.f32.mrf.mxu1 }
 0x352   : > { %v726_v39 = vadd.f32 %v894_v4, %v725_v36 }
 0x354   : > { %v727_v40 = vsel %vm149_vm1, %v726_v39, -inf }
 0x355   : > { %728 = vmax.xlane.f32.xlu1 %v727_v40 }
 0x366   : > { %404 = vrot.lane.b32.xlu1 %v1070_v1, %s1023_s27 }
 0x3d6   : > { %v395_v41 = vpop.xlane.xlu1 %394 }
 0x3d7   : > { %v396_v42 = vsub.f32 %v392_v29, %v395_v41 }
 0x3d9   : > { %v397_v43 = vmul.f32 1.442695, %v396_v42 }
 0x3da   : > { %v562_v44 = vpop.xlane.xlu0 %561 }
 0x3db   : > { %993 = vpow2.f32 %v397_v43  ;;  %v563_v45 = vsub.f32 %v559_v34, %v562_v44 }
 0x3dd   : > { %v564_v46 = vmul.f32 1.442695, %v563_v45 }
 0x3de   : > { %v729_v47 = vpop.xlane.xlu1 %728 }
 0x3df   : > { %995 = vpow2.f32 %v564_v46  ;;  %v730_v48 = vsub.f32 %v726_v39, %v729_v47 }
 0x3e1   : > { %v731_v49 = vmul.f32 1.442695, %v730_v48 }
 0x3e2   : > { %v405_v50 = vpop.permute.xlu1 %404 }
 0x3e3   : > { %997 = vpow2.f32 %v731_v49  ;;  %941 = vmatpush3.msra.mxu0 %v405_v50 }
 0x3e4   : > { %950 = vmatprep.subr.mxu0 %v1013_v0 }
 0x3e8   : > { %v994_v51 = vpop.eup %993 }
 0x3e9   : > { %v399_v52 = vsel %vm149_vm1, %v994_v51, 0.0 }
 0x3ea   : > { %400 = vadd.xlane.f32.xlu1 %v399_v52 }
 0x3ec   : > { %v996_v53 = vpop.eup %995 }
 0x3ed   : > { %v566_v54 = vsel %vm149_vm1, %v996_v53, 0.0 }
 0x3ee   : > { %567 = vadd.xlane.f32.xlu1 %v566_v54 }
 0x3f0   : > { %v998_v55 = vpop.eup %997 }
 0x3f1   : > { %v733_v56 = vsel %vm149_vm1, %v998_v55, 0.0 }
 0x3f2   : > { %734 = vadd.xlane.f32.xlu0 %v733_v56 }
 0x3ff   : > { %738 = vrot.lane.b32.xlu1 %v1070_v1, %s1024_s28 }
 0x408   : > { %571 = vrot.lane.b32.xlu0 %v1070_v1, %s1025_s29 }
 0x473   : > { %v401_v57 = vpop.xlane.xlu1 %400 }
 0x474   : > { %999 = vrcp.f32 %v401_v57 }
 0x477   : > { %v568_v58 = vpop.xlane.xlu1 %567 }
 0x478   : > { %1001 = vrcp.f32 %v568_v58 }
 0x47b   : > { %v735_v59 = vpop.xlane.xlu0 %734  ;;  %v739_v2 = vpop.permute.xlu1 %738 }
 0x47c   : > { %1003 = vrcp.f32 %v735_v59 }
 0x47f   : > { %v572_v61 = vpop.permute.xlu0 %571 }
 0x481   : > { %v1000_v60 = vpop.eup %999 }
 0x482   : > { %v403_v62 = vmul.f32 %v1000_v60, %v994_v51 }
 0x484   : > { %943 = vmatmul.mubr.msk.f32.vlgmr.msra.gmra.mxu0 %vm149_vm1, %v403_v62 }
 0x485   : > { %v1002_v63 = vpop.eup %1001  ;;  %951 = vmatpush3.msra.mxu0 %v572_v61  ;;  %952 = vmatprep.mubr.msk.f32.mxu0 %vm1014_vm0, %v1013_v0 }
 0x486   : > { %960 = vmatprep.subr.mxu0 %v1013_v0  ;;  %v570_v1 = vmul.f32 %v1002_v63, %v996_v53 }
 0x488   : > { %953 = vmatmul.mubr.msk.f32.vlgmr.msra.gmra.mxu0 %vm149_vm1, %v570_v1 }
 0x489   : > { %v1004_v3 = vpop.eup %1003  ;;  %961 = vmatpush3.msra.mxu0 %v739_v2  ;;  %962 = vmatprep.mubr.msk.f32.mxu0 %vm1014_vm0, %v1013_v0 }
 0x48a   : > { %v737_v4 = vmul.f32 %v1004_v3, %v998_v55 }
 0x48c   : > { %963 = vmatmul.mubr.msk.f32.vlgmr.msra.gmra.mxu0 %vm149_vm1, %v737_v4 }
 0x544   : > { %v476_v5 = vpop.f32.mrf.mxu0 }
 0x545   : > { %815 = vrot.lane.b32.xlu1 %v476_v5, %s1026_s30 }
 0x546   : > { %v944_v6 = vpop.f32.mrf.mxu0 }
 0x548   : > { %v643_v7 = vpop.f32.mrf.mxu0 }
 0x549   : > { %819 = vrot.lane.b32.xlu0 %v643_v7, %s1027_s3 }
 0x54a   : > { %v954_v8 = vpop.f32.mrf.mxu0 }
 0x54c   : > { %v810_v9 = vpop.f32.mrf.mxu0 }
 0x54d   : > { %823 = vrot.lane.b32.xlu1 %v810_v9, %s1028_s4 }
 0x54e   : > { %v964_v10 = vpop.f32.mrf.mxu0 }
 0x5b7   : > { %v816_v11 = vpop.permute.xlu1 %815 }
 0x5b8   : > { %v826_v0 = vsel %vm149_vm1, %v1108_v24, %v816_v11 }
 0x5bb   : > { %v820_v12 = vpop.permute.xlu0 %819 }
 0x5bc   : > { %v828_v13 = vsel %vm827_vm2, %v826_v0, %v820_v12 }
 0x5bf   : > { %v824_v14 = vpop.permute.xlu1 %823 }
 0x5c0   : > { %v830_v15 = vsel %vm829_vm3, %v828_v13, %v824_v14 }
 0x5c1   : > { %832 = vst.msk [vmem:[%s138_s7] sm:$0xff] %vm831_vm4, %v830_v15 }
 0x5c2 PF: > { %s12_s9 = sadd.s32 1, %s1011_s9  }
 0x5c3   : > { %p9_p4 = scmp.ge.s32.totalorder %s12_s9, 4  }
 0x5c5   :  { %11 = sbr.rel (!%p9_p4) target bundleno = 1 (0x1), region = 59 }

// kernel: transformer_autoencoder_forward.39
= control target key start
LH: loop header
LB: loop body
LE: loop exit
PB: predicated region body
PF: predicated region fallthrough
CT: control target
= control target key end

     0   :  { %vm33_vm0 = vcmask 261120   ;;  %vm132_vm1 = vcmask 523264   ;;  %s360_s1 = inlined_call_operand.vmem [shape: f32[32,64], index: 1, kind: input, shape index: {}]   ;;  %s361_s0 = inlined_call_operand.vmem [shape: f32[16,32], index: 0, kind: input, shape index: {}]   ;;  %s362_s3 = inlined_call_operand.vmem [shape: f32[64,32], index: 3, kind: input, shape index: {}]   ;;  %s363_s2 = inlined_call_operand.vmem [shape: f32[1,64], index: 2, kind: input, shape index: {}]   ;;  %s364_s4 = inlined_call_operand.vmem [shape: f32[1,32], index: 4, kind: input, shape index: {}]   ;;  %s365_s5 = inlined_call_operand.vmem [shape: f32[16,32], index: 5, kind: output, shape index: {}]  }
   0x1   :  { %v25_v0 = vld [vmem:[%s360_s1 + $0x18] sm:$0xff]  ;;  %v24_v1 = vld [vmem:[%s360_s1 + $0x10] sm:$0xff]  ;;  %v20_v2 = vld [vmem:[%s361_s0] sm:$0xff] }
   0x2   :  { %242 = vmatprep.subr.mxu0 %v25_v0  ;;  %v23_v3 = vld [vmem:[%s360_s1 + $0x8] sm:$0xff]  ;;  %250 = vmatprep.mubr.msk.f32.mxu0 %vm33_vm0, %v20_v2  ;;  %v124_v4 = vld [vmem:[%s362_s3 + $0x38] sm:$0xff]  ;;  %v123_v5 = vld [vmem:[%s362_s3 + $0x30] sm:$0xff] }
   0x3   :  { %243 = vmatpush3.msra.mxu0 %v25_v0  ;;  %253 = vmatprep.subr.mxu1 %v124_v4  ;;  %v22_v6 = vld [vmem:[%s360_s1] sm:$0xff]  ;;  %v122_v7 = vld [vmem:[%s362_s3 + $0x28] sm:$0xff]  ;;  %v120_v10 = vld [vmem:[%s362_s3 + $0x18] sm:$0xff] }
   0x4   :  { %244 = vmatprep.subr.mxu0 %v24_v1  ;;  %254 = vmatpush3.msra.mxu1 %v124_v4  ;;  %v21_v8 = vld [vmem:[%s361_s0 + $0x8] sm:$0xff]  ;;  %v121_v9 = vld [vmem:[%s362_s3 + $0x20] sm:$0xff]  ;;  %v119_v11 = vld [vmem:[%s362_s3 + $0x10] sm:$0xff] }
   0x5   :  { %245 = vmatpush3.msra.mxu0 %v24_v1  ;;  %255 = vmatprep.subr.mxu1 %v123_v5  ;;  %v118_v12 = vld [vmem:[%s362_s3 + $0x8] sm:$0xff]  ;;  %v117_v13 = vld [vmem:[%s362_s3] sm:$0xff] }
   0x6   :  { %246 = vmatprep.subr.mxu0 %v23_v3  ;;  %256 = vmatpush3.msra.mxu1 %v123_v5  ;;  %v220_v14 = vld [vmem:[%s363_s2] ss:$0 sm:$0xff] }
   0x7   :  { %247 = vmatpush3.msra.mxu0 %v23_v3  ;;  %257 = vmatprep.subr.mxu1 %v122_v7  ;;  %v223_v21 = vld [vmem:[%s364_s4] ss:$0 sm:$0xff] }
   0x8   :  { %248 = vmatprep.subr.mxu0 %v22_v6  ;;  %258 = vmatpush3.msra.mxu1 %v122_v7 }
   0x9   :  { %249 = vmatpush3.msra.mxu0 %v22_v6  ;;  %259 = vmatprep.subr.mxu1 %v121_v9 }
   0xa   :  { %251 = vmatmul.mubr.msk.f32.vlgmr.msra.gmra.mxu0 %vm33_vm0, %v21_v8  ;;  %260 = vmatpush3.msra.mxu1 %v121_v9 }
   0xb   :  { %261 = vmatprep.subr.mxu1 %v120_v10 }
   0xc   :  { %262 = vmatpush3.msra.mxu1 %v120_v10 }
   0xd   :  { %263 = vmatprep.subr.mxu1 %v119_v11 }
   0xe   :  { %264 = vmatpush3.msra.mxu1 %v119_v11 }
   0xf   :  { %265 = vmatprep.subr.mxu1 %v118_v12 }
  0x10   :  { %266 = vmatpush3.msra.mxu1 %v118_v12 }
  0x11   :  { %267 = vmatprep.subr.mxu1 %v117_v13 }
  0x12   :  { %268 = vmatpush3.msra.mxu1 %v117_v13 }
  0xca   :  { %v252_v15 = vpop.f32.mrf.mxu0 }
  0xcb   :  { %v112_v16 = vadd.f32 %v252_v15, %v220_v14 }
  0xcc   :  { %v106_v17 = vpop.f32.mrf.mxu0 }
  0xcd   :  { %v107_v18 = vadd.f32 %v220_v14, %v106_v17  ;;  %v116_v20 = vmax.f32 %v112_v16, 0.0 }
  0xcf   :  { %v115_v19 = vmax.f32 %v107_v18, 0.0 }
  0xd1   :  { %269 = vmatprep.mubr.msk.f32.mxu1 %vm132_vm1, %v115_v19 }
  0xd2   :  { %270 = vmatmul.mubr.msk.f32.vlgmr.msra.gmra.mxu1 %vm132_vm1, %v116_v20 }
 0x192   :  { %v271_v22 = vpop.f32.mrf.mxu1 }
 0x193   :  { %v211_v23 = vadd.f32 %v271_v22, %v223_v21 }
 0x194   :  { %v205_v24 = vpop.f32.mrf.mxu1 }
 0x195   :  { %215 = vst.msk [vmem:[%s365_s5 + $0x8] sm:$0xff] %vm33_vm0, %v211_v23  ;;  %v206_v25 = vadd.f32 %v223_v21, %v205_v24 }
 0x197   :  { %214 = vst.msk [vmem:[%s365_s5] sm:$0xff] %vm33_vm0, %v206_v25 }

// kernel: transformer_autoencoder_forward.52
= control target key start
LH: loop header
LB: loop body
LE: loop exit
PB: predicated region body
PF: predicated region fallthrough
CT: control target
= control target key end

     0   :  { %vm29_vm0 = vcmask 261120   ;;  %vm18_vm1 = vcmask 523264   ;;  %v157_v2 = vmov 0.0   ;;  %s213_s1 = inlined_call_operand.vmem [shape: f32[32,64], index: 1, kind: input, shape index: {}]   ;;  %s214_s0 = inlined_call_operand.vmem [shape: f32[16,32], index: 0, kind: input, shape index: {}]   ;;  %s215_s2 = inlined_call_operand.vmem [shape: f32[1,64], index: 2, kind: input, shape index: {}]   ;;  %s216_s3 = inlined_call_operand.vmem [shape: f32[16,64], index: 3, kind: output, shape index: {}]  }
   0x1   :  { %v28_v0 = vld [vmem:[%s213_s1 + $0x18] sm:$0xff]  ;;  %v27_v1 = vld [vmem:[%s213_s1 + $0x10] sm:$0xff]  ;;  %20 = vst.msk [vmem:[#allocation2 + $0x8] sm:$0xff] %vm18_vm1, %v157_v2  ;;  %19 = vst.msk [vmem:[#allocation2] sm:$0xff] %vm18_vm1, %v157_v2 }
   0x2   :  { %145 = vmatprep.subr.mxu0 %v28_v0  ;;  %v23_v3 = vld [vmem:[%s214_s0] sm:$0xff]  ;;  %v26_v4 = vld [vmem:[%s213_s1 + $0x8] sm:$0xff] }
   0x3   :  { %146 = vmatpush3.msra.mxu0 %v28_v0  ;;  %153 = vmatprep.mubr.msk.f32.mxu0 %vm29_vm0, %v23_v3  ;;  %v25_v5 = vld [vmem:[%s213_s1] sm:$0xff]  ;;  %v24_v6 = vld [vmem:[%s214_s0 + $0x8] sm:$0xff] }
   0x4   :  { %147 = vmatprep.subr.mxu0 %v27_v1  ;;  %v138_v13 = vld [vmem:[%s215_s2] ss:$0 sm:$0xff] }
   0x5   :  { %148 = vmatpush3.msra.mxu0 %v27_v1 }
   0x6   :  { %149 = vmatprep.subr.mxu0 %v26_v4 }
   0x7   :  { %150 = vmatpush3.msra.mxu0 %v26_v4 }
   0x8   :  { %151 = vmatprep.subr.mxu0 %v25_v5  ;;  %v22_v7 = vld [vmem:[#allocation2 + $0x8] sm:$0xff]  ;;  %v21_v9 = vld [vmem:[#allocation2] sm:$0xff] }
   0x9   :  { %152 = vmatpush3.msra.mxu0 %v25_v5 }
   0xa   :  { %154 = vmatmul.mubr.msk.f32.vlgmr.msra.gmra.mxu0 %vm29_vm0, %v24_v6 }
  0xca   :  { %v155_v8 = vpop.f32.mrf.mxu0 }
  0xcb   :  { %v112_v10 = vadd.f32 %v155_v8, %v22_v7 }
  0xcc   :  { %v102_v11 = vpop.f32.mrf.mxu0 }
  0xcd   :  { %115 = vst.msk [vmem:[#allocation2 + $0x8] sm:$0xff] %vm18_vm1, %v112_v10  ;;  %v111_v12 = vadd.f32 %v102_v11, %v21_v9 }
  0xcf   :  { %114 = vst.msk [vmem:[#allocation2] sm:$0xff] %vm18_vm1, %v111_v12 }
  0xd4   :  { %v120_v14 = vld [vmem:[#allocation2 + $0x8] sm:$0xff] }
  0xd5   :  { %v129_v15 = vadd.f32 %v138_v13, %v120_v14 }
  0xd6   :  { %v119_v16 = vld [vmem:[#allocation2] sm:$0xff] }
  0xd7   :  { %131 = vst.msk [vmem:[%s216_s3 + $0x8] sm:$0xff] %vm18_vm1, %v129_v15  ;;  %v128_v17 = vadd.f32 %v138_v13, %v119_v16 }
  0xd9   :  { %130 = vst.msk [vmem:[%s216_s3] sm:$0xff] %vm18_vm1, %v128_v17 }

// kernel: transformer_autoencoder_forward.48
= control target key start
LH: loop header
LB: loop body
LE: loop exit
PB: predicated region body
PF: predicated region fallthrough
CT: control target
= control target key end

     0   :  { %s1050_s9 = smov 0   ;;  %s1144_s0 = inlined_call_operand.vmem [shape: f32[2,8,96], index: 0, kind: input, shape index: {}]   ;;  %s1145_s1 = inlined_call_operand.vmem [shape: f32[2,8], index: 1, kind: input, shape index: {}]   ;;  %s1146_s2 = inlined_call_operand.vmem [shape: f32[2,8,32], index: 2, kind: output, shape index: {}]  }
   0x1 LB: > { %s1056_s10 = sadd.s32 4294967295, %s1017_s9   ;;  %p897_p0 = scmp.ge.s32.totalorder %s1017_s9, 1  ;;  %s1017_s9 = sphi %s1050_s9, %s12_s9  }
   0x2   : > { %p111_p1 = scmp.lt.s32.totalorder %s1017_s9, 3 }
   0x4   : > { %p112_p2 = pnand %p897_p0, %p111_p1 }
   0x5   : > { %p131_p3 = scmp.lt.s32.totalorder (!%p112_p2), %s1056_s10, 1  ;;  %s1021_s16 = smov (!%p112_p2), 96  }
   0x6   : > { %115 = sbr.rel (%p112_p2) target bundleno = 1474 (0x5c2), region = 28  ;;  %s1022_s17 = smov (!%p112_p2), 64  }
   0x7   : > { %s1023_s18 = smov (!%p112_p2), 88   ;;  %s1024_s19 = smov (!%p112_p2), 120  }
   0x8   : > { %s1025_s20 = smov (!%p112_p2), 80   ;;  %s140_s23 = scalar_lea.vmem (!%p112_p2), %s1145_s1, %s1056_s10 }
   0x9   : > { %s1026_s24 = smov (!%p112_p2), 72   ;;  %s1027_s25 = smov (!%p112_p2), 112  }
   0xa   : > { %s1028_s26 = smov (!%p112_p2), 104   ;;  %s1029_s27 = smov (!%p112_p2), 56  }
   0xb   : > { %v1019_v0 = vmov 0.0   ;;  %vm1020_vm0 = vmmov 0   ;;  %s1065_s11 = scalar_select %p131_p3, %s1056_s10, 1  ;;  %vm155_vm1 = vcmask 64512   ;;  %v146_v3 = vlaneseq  ;;  %v900_v6 = vld [vmem:[%s140_s23] ss:$0 sm:$0xff] }
   0xc   : > { %931 = vmatprep.subr.mxu0 %v1019_v0  ;;  %933 = vmatprep.mubr.msk.f32.mxu0 %vm1020_vm0, %v1019_v0  ;;  %s1030_s28 = smov 40   ;;  %s1031_s29 = smov 48   ;;  %vm833_vm3 = vcmask 130048   ;;  %vm835_vm4 = vcmask 195584   ;;  %vm837_vm5 = vcmask 261120  }
   0xd   : > { %936 = vmatprep.subr.mxu1 %v1019_v0  ;;  %938 = vmatprep.mubr.msk.f32.mxu1 %vm1020_vm0, %v1019_v0  ;;  %s898_s12 = sshll.u32 %s1065_s11, 3  ;;  %v147_v4 = vshrl.u32 %v146_v3, 7  ;;  %v149_v5 = vand.u32 127, %v146_v3  ;;  %s1032_s30 = smov 8  }
   0xe   : > { %s134_s15 = scalar_lea.vmem %s1144_s0, %s898_s12  ;;  %s1033_s3 = smov 16  }
   0xf   : > { %v1076_v1 = vld [vmem:[%s134_s15] sm:$0xff]  ;;  %vm150_vm2 = vcmp.gt.s32.totalorder %v149_v5, %v147_v4  ;;  %s1034_s4 = smov 24   ;;  %s138_s7 = scalar_lea.vmem %s1146_s2, %s898_s12 }
  0x10   : > { %153 = vrot.lane.b32.xlu0 %v1076_v1, %s1021_s16  ;;  %243 = vrot.lane.b32.xlu1 %v1076_v1, %s1022_s17  ;;  %v151_v8 = vsel %vm150_vm2, -1e+30, %v900_v6 }
  0x14   : > { %321 = vrot.lane.b32.xlu1 %v1076_v1, %s1023_s18 }
  0x18   : > { %319 = vrot.lane.b32.xlu1 %v1076_v1, %s1024_s19 }
  0x1c   : > { %488 = vrot.lane.b32.xlu1 %v1076_v1, %s1025_s20 }
  0x82   : > { %v154_v2 = vpop.permute.xlu0 %153  ;;  %v244_v13 = vpop.permute.xlu1 %243 }
  0x83   : > { %932 = vmatpush3.xpose.msk.msra.mxu0 %vm155_vm1, %v154_v2  ;;  %937 = vmatpush3.msra.mxu1 %v244_v13 }
  0x84   : > { %946 = vmatprep.subr.mxu0 %v1019_v0  ;;  %941 = vmatprep.subr.mxu1 %v1019_v0 }
  0x86   : > { %934 = vmatmul.mubr.msk.f32.vlgmr.msra.gmra.mxu0 %vm155_vm1, %v1076_v1  ;;  %v322_v19 = vpop.permute.xlu1 %321 }
  0x87   : > { %948 = vmatprep.mubr.msk.f32.mxu0 %vm1020_vm0, %v1019_v0 }
  0x8a   : > { %v320_v20 = vpop.permute.xlu1 %319 }
  0x8e   : > { %v489_v21 = vpop.permute.xlu1 %488 }
 0x146   : > { %v226_v7 = vpop.f32.mrf.mxu0 }
 0x147   : > { %v230_v9 = vmul.f32 0.35355338, %v226_v7 }
 0x148   : > { %v935_v10 = vpop.f32.mrf.mxu0 }
 0x149   : > { %v231_v11 = vadd.f32 %v230_v9, %v151_v8 }
 0x14b   : > { %v232_v12 = vsel %vm155_vm1, %v231_v11, -inf }
 0x14c   : > { %233 = vmax.xlane.f32.xlu0 %v232_v12 }
 0x162   : > { %655 = vrot.lane.b32.xlu0 %v1076_v1, %s1026_s24 }
 0x1d5   : > { %v234_v14 = vpop.xlane.xlu0 %233 }
 0x1d6   : > { %v235_v15 = vsub.f32 %v231_v11, %v234_v14 }
 0x1d8   : > { %v236_v16 = vmul.f32 1.442695, %v235_v15 }
 0x1d9   : > { %v656_v26 = vpop.permute.xlu0 %655 }
 0x1da   : > { %995 = vpow2.f32 %v236_v16 }
 0x1e7   : > { %v996_v17 = vpop.eup %995 }
 0x1e8   : > { %v238_v18 = vsel %vm155_vm1, %v996_v17, 0.0 }
 0x1e9   : > { %239 = vadd.xlane.f32.xlu1 %v238_v18 }
 0x1fa   : > { %486 = vrot.lane.b32.xlu1 %v1076_v1, %s1027_s25 }
 0x1fe   : > { %653 = vrot.lane.b32.xlu1 %v1076_v1, %s1028_s26 }
 0x272   : > { %v240_v22 = vpop.xlane.xlu1 %239 }
 0x273   : > { %997 = vrcp.f32 %v240_v22 }
 0x276   : > { %v487_v25 = vpop.permute.xlu1 %486 }
 0x27a   : > { %v654_v27 = vpop.permute.xlu1 %653 }
 0x280   : > { %v998_v23 = vpop.eup %997 }
 0x281   : > { %v242_v24 = vmul.f32 %v998_v23, %v996_v17 }
 0x283   : > { %939 = vmatmul.mubr.msk.f32.vlgmr.msra.gmra.mxu1 %vm155_vm1, %v242_v24 }
 0x284   : > { %942 = vmatpush3.xpose.msk.msra.mxu1 %vm155_vm1, %v322_v19  ;;  %943 = vmatprep.mubr.msk.f32.mxu1 %vm1020_vm0, %v1019_v0 }
 0x285   : > { %951 = vmatprep.subr.mxu1 %v1019_v0 }
 0x287   : > { %944 = vmatmul.mubr.msk.f32.vlgmr.msra.gmra.mxu1 %vm155_vm1, %v320_v20 }
 0x288   : > { %952 = vmatpush3.xpose.msk.msra.mxu1 %vm155_vm1, %v489_v21  ;;  %953 = vmatprep.mubr.msk.f32.mxu1 %vm1020_vm0, %v1019_v0 }
 0x289   : > { %961 = vmatprep.subr.mxu1 %v1019_v0 }
 0x28b   : > { %954 = vmatmul.mubr.msk.f32.vlgmr.msra.gmra.mxu1 %vm155_vm1, %v487_v25 }
 0x28c   : > { %962 = vmatpush3.xpose.msk.msra.mxu1 %vm155_vm1, %v656_v26  ;;  %963 = vmatprep.mubr.msk.f32.mxu1 %vm1020_vm0, %v1019_v0 }
 0x28f   : > { %964 = vmatmul.mubr.msk.f32.vlgmr.msra.gmra.mxu1 %vm155_vm1, %v654_v27 }
 0x343   : > { %v1114_v28 = vpop.f32.mrf.mxu1 }
 0x345   : > { %v940_v29 = vpop.f32.mrf.mxu1 }
 0x347   : > { %v393_v30 = vpop.f32.mrf.mxu1 }
 0x348   : > { %v397_v31 = vmul.f32 0.35355338, %v393_v30 }
 0x349   : > { %v945_v32 = vpop.f32.mrf.mxu1 }
 0x34a   : > { %v398_v33 = vadd.f32 %v397_v31, %v151_v8 }
 0x34b   : > { %v560_v34 = vpop.f32.mrf.mxu1 }
 0x34c   : > { %v564_v35 = vmul.f32 0.35355338, %v560_v34  ;;  %v399_v36 = vsel %vm155_vm1, %v398_v33, -inf }
 0x34d   : > { %400 = vmax.xlane.f32.xlu1 %v399_v36  ;;  %v955_v37 = vpop.f32.mrf.mxu1 }
 0x34e   : > { %v565_v38 = vadd.f32 %v564_v35, %v151_v8 }
 0x34f   : > { %v727_v39 = vpop.f32.mrf.mxu1 }
 0x350   : > { %v731_v40 = vmul.f32 0.35355338, %v727_v39  ;;  %v566_v41 = vsel %vm155_vm1, %v565_v38, -inf }
 0x351   : > { %567 = vmax.xlane.f32.xlu0 %v566_v41  ;;  %v965_v42 = vpop.f32.mrf.mxu1 }
 0x352   : > { %v732_v43 = vadd.f32 %v731_v40, %v151_v8 }
 0x354   : > { %v733_v44 = vsel %vm155_vm1, %v732_v43, -inf }
 0x355   : > { %734 = vmax.xlane.f32.xlu1 %v733_v44 }
 0x366   : > { %410 = vrot.lane.b32.xlu1 %v1076_v1, %s1029_s27 }
 0x3d6   : > { %v401_v45 = vpop.xlane.xlu1 %400 }
 0x3d7   : > { %v402_v46 = vsub.f32 %v398_v33, %v401_v45 }
 0x3d9   : > { %v403_v47 = vmul.f32 1.442695, %v402_v46 }
 0x3da   : > { %v568_v48 = vpop.xlane.xlu0 %567 }
 0x3db   : > { %999 = vpow2.f32 %v403_v47  ;;  %v569_v49 = vsub.f32 %v565_v38, %v568_v48 }
 0x3dd   : > { %v570_v50 = vmul.f32 1.442695, %v569_v49 }
 0x3de   : > { %v735_v51 = vpop.xlane.xlu1 %734 }
 0x3df   : > { %1001 = vpow2.f32 %v570_v50  ;;  %v736_v52 = vsub.f32 %v732_v43, %v735_v51 }
 0x3e1   : > { %v737_v53 = vmul.f32 1.442695, %v736_v52 }
 0x3e2   : > { %v411_v54 = vpop.permute.xlu1 %410 }
 0x3e3   : > { %1003 = vpow2.f32 %v737_v53  ;;  %947 = vmatpush3.msra.mxu0 %v411_v54 }
 0x3e4   : > { %956 = vmatprep.subr.mxu0 %v1019_v0 }
 0x3e8   : > { %v1000_v55 = vpop.eup %999 }
 0x3e9   : > { %v405_v56 = vsel %vm155_vm1, %v1000_v55, 0.0 }
 0x3ea   : > { %406 = vadd.xlane.f32.xlu1 %v405_v56 }
 0x3ec   : > { %v1002_v57 = vpop.eup %1001 }
 0x3ed   : > { %v572_v58 = vsel %vm155_vm1, %v1002_v57, 0.0 }
 0x3ee   : > { %573 = vadd.xlane.f32.xlu1 %v572_v58 }
 0x3f0   : > { %v1004_v59 = vpop.eup %1003 }
 0x3f1   : > { %v739_v60 = vsel %vm155_vm1, %v1004_v59, 0.0 }
 0x3f2   : > { %740 = vadd.xlane.f32.xlu0 %v739_v60 }
 0x3ff   : > { %744 = vrot.lane.b32.xlu1 %v1076_v1, %s1030_s28 }
 0x408   : > { %577 = vrot.lane.b32.xlu0 %v1076_v1, %s1031_s29 }
 0x473   : > { %v407_v61 = vpop.xlane.xlu1 %406 }
 0x474   : > { %1005 = vrcp.f32 %v407_v61 }
 0x477   : > { %v574_v62 = vpop.xlane.xlu1 %573 }
 0x478   : > { %1007 = vrcp.f32 %v574_v62 }
 0x47b   : > { %v741_v63 = vpop.xlane.xlu0 %740  ;;  %v745_v6 = vpop.permute.xlu1 %744 }
 0x47c   : > { %1009 = vrcp.f32 %v741_v63 }
 0x47f   : > { %v578_v3 = vpop.permute.xlu0 %577 }
 0x481   : > { %v1006_v2 = vpop.eup %1005 }
 0x482   : > { %v409_v4 = vmul.f32 %v1006_v2, %v1000_v55 }
 0x484   : > { %949 = vmatmul.mubr.msk.f32.vlgmr.msra.gmra.mxu0 %vm155_vm1, %v409_v4 }
 0x485   : > { %v1008_v5 = vpop.eup %1007  ;;  %957 = vmatpush3.msra.mxu0 %v578_v3  ;;  %958 = vmatprep.mubr.msk.f32.mxu0 %vm1020_vm0, %v1019_v0 }
 0x486   : > { %966 = vmatprep.subr.mxu0 %v1019_v0  ;;  %v576_v1 = vmul.f32 %v1008_v5, %v1002_v57 }
 0x488   : > { %959 = vmatmul.mubr.msk.f32.vlgmr.msra.gmra.mxu0 %vm155_vm1, %v576_v1 }
 0x489   : > { %v1010_v7 = vpop.eup %1009  ;;  %967 = vmatpush3.msra.mxu0 %v745_v6  ;;  %968 = vmatprep.mubr.msk.f32.mxu0 %vm1020_vm0, %v1019_v0 }
 0x48a   : > { %v743_v8 = vmul.f32 %v1010_v7, %v1004_v59 }
 0x48c   : > { %969 = vmatmul.mubr.msk.f32.vlgmr.msra.gmra.mxu0 %vm155_vm1, %v743_v8 }
 0x544   : > { %v482_v9 = vpop.f32.mrf.mxu0 }
 0x545   : > { %821 = vrot.lane.b32.xlu1 %v482_v9, %s1032_s30 }
 0x546   : > { %v950_v10 = vpop.f32.mrf.mxu0 }
 0x548   : > { %v649_v11 = vpop.f32.mrf.mxu0 }
 0x549   : > { %825 = vrot.lane.b32.xlu0 %v649_v11, %s1033_s3 }
 0x54a   : > { %v960_v12 = vpop.f32.mrf.mxu0 }
 0x54c   : > { %v816_v13 = vpop.f32.mrf.mxu0 }
 0x54d   : > { %829 = vrot.lane.b32.xlu1 %v816_v13, %s1034_s4 }
 0x54e   : > { %v970_v14 = vpop.f32.mrf.mxu0 }
 0x5b7   : > { %v822_v15 = vpop.permute.xlu1 %821 }
 0x5b8   : > { %v832_v0 = vsel %vm155_vm1, %v1114_v28, %v822_v15 }
 0x5bb   : > { %v826_v16 = vpop.permute.xlu0 %825 }
 0x5bc   : > { %v834_v17 = vsel %vm833_vm3, %v832_v0, %v826_v16 }
 0x5bf   : > { %v830_v18 = vpop.permute.xlu1 %829 }
 0x5c0   : > { %v836_v19 = vsel %vm835_vm4, %v834_v17, %v830_v18 }
 0x5c1   : > { %838 = vst.msk [vmem:[%s138_s7] sm:$0xff] %vm837_vm5, %v836_v19 }
 0x5c2 PF: > { %s12_s9 = sadd.s32 1, %s1017_s9  }
 0x5c3   : > { %p9_p4 = scmp.ge.s32.totalorder %s12_s9, 4  }
 0x5c5   :  { %11 = sbr.rel (!%p9_p4) target bundleno = 1 (0x1), region = 59 }

// kernel: transformer_autoencoder_forward.69
= control target key start
LH: loop header
LB: loop body
LE: loop exit
PB: predicated region body
PF: predicated region fallthrough
CT: control target
= control target key end

     0   :  { %vm30_vm0 = vcmask 261120   ;;  %vm19_vm1 = vcmask 408576   ;;  %v195_v3 = vmov 0.0   ;;  %s251_s0 = inlined_call_operand.vmem [shape: f32[16,32], index: 0, kind: input, shape index: {}]   ;;  %s252_s1 = inlined_call_operand.vmem [shape: f32[32,50], index: 1, kind: input, shape index: {}]   ;;  %s253_s2 = inlined_call_operand.vmem [shape: f32[1,50], index: 2, kind: input, shape index: {}]   ;;  %s254_s3 = inlined_call_operand.hbm [shape: f32[16,50], index: 3, kind: output, shape index: {}]  }
   0x1   :  { %v29_v0 = vld [vmem:[%s252_s1 + $0x18] sm:$0xff]  ;;  %v28_v1 = vld [vmem:[%s252_s1 + $0x10] sm:$0xff]  ;;  %v24_v2 = vld [vmem:[%s251_s0] sm:$0xff]  ;;  %21 = vst.msk [vmem:[#allocation2 + $0x8] sm:$0xff] %vm19_vm1, %v195_v3 }
   0x2   :  { %158 = vmatprep.subr.mxu0 %v29_v0  ;;  %20 = vst.msk [vmem:[#allocation2] sm:$0xff] %vm19_vm1, %v195_v3  ;;  %v27_v4 = vld [vmem:[%s252_s1 + $0x8] sm:$0xff]  ;;  %166 = vmatprep.mubr.msk.f32.mxu0 %vm30_vm0, %v24_v2 }
   0x3   :  { %159 = vmatpush3.msra.mxu0 %v29_v0 }
   0x4   :  { %8 = vsyncpa [#allocation4], 0  ;;  %160 = vmatprep.subr.mxu0 %v28_v1  ;;  %v26_v5 = vld [vmem:[%s252_s1] sm:$0xff]  ;;  %v25_v6 = vld [vmem:[%s251_s0 + $0x8] sm:$0xff]  ;;  %s196_s25 = smov [#allocation3]  }
   0x5   :  { %161 = vmatpush3.msra.mxu0 %v28_v1  ;;  %v151_v13 = vld [vmem:[%s253_s2] ss:$0 sm:$0xff]  ;;  %s138_s0 = sshll.u32 %s196_s25, 4  ;;  %s139_s0 = int_to_ptr.vmem [resolvable:$true] %s138_s0 }
   0x6   :  { %162 = vmatprep.subr.mxu0 %v27_v4  ;;  %s173_s26 = scalar_lea.vmem %s139_s0, 256  ;;  %p178_p1 = scmp.lt.s32.totalorder %s139_s0, %s139_s0 }
   0x7   :  { %163 = vmatpush3.msra.mxu0 %v27_v4  ;;  %p174_p0 = scmp.ne.s32.totalorder %s139_s0, %s173_s26  ;;  %p179_p2 = scmp.lt.s32.totalorder %s173_s26, %s173_s26 }
   0x8   :  { %164 = vmatprep.subr.mxu0 %v26_v5  ;;  %v23_v7 = vld [vmem:[#allocation2 + $0x8] sm:$0xff] }
   0x9   :  { %165 = vmatpush3.msra.mxu0 %v26_v5  ;;  %v22_v9 = vld [vmem:[#allocation2] sm:$0xff]  ;;  %p180_p3 = por %p179_p2, %p178_p1 }
   0xa   :  { %167 = vmatmul.mubr.msk.f32.vlgmr.msra.gmra.mxu0 %vm30_vm0, %v25_v6 }
   0xb   :  { %p181_p4 = pnand %p180_p3, %p174_p0 }
  0xca   :  { %v168_v8 = vpop.f32.mrf.mxu0 }
  0xcb   :  { %v113_v10 = vadd.f32 %v168_v8, %v23_v7 }
  0xcc   :  { %v103_v11 = vpop.f32.mrf.mxu0 }
  0xcd   :  { %116 = vst.msk [vmem:[#allocation2 + $0x8] sm:$0xff] %vm19_vm1, %v113_v10  ;;  %v112_v12 = vadd.f32 %v103_v11, %v22_v9 }
  0xcf   :  { %115 = vst.msk [vmem:[#allocation2] sm:$0xff] %vm19_vm1, %v112_v12 }
  0xd4   :  { %v121_v14 = vld [vmem:[#allocation2 + $0x8] sm:$0xff] }
  0xd5   :  { %v130_v15 = vadd.f32 %v151_v13, %v121_v14 }
  0xd6   :  { %v120_v16 = vld [vmem:[#allocation2] sm:$0xff] }
  0xd7   :  { %v129_v17 = vadd.f32 %v151_v13, %v120_v16  ;;  %132 = vst.msk [vmem:[#allocation3 + $0x8] sm:$0xff] %vm19_vm1, %v130_v15 }
  0xd9   :  { %131 = vst.msk [vmem:[#allocation3] sm:$0xff] %vm19_vm1, %v129_v17 }
  0xda   :  { %184 = shalt.err (!%p181_p4)
}
  0xdb   :  { %s197_s27 = smov 128   ;;  %s198_s2 = smov 8  }
  0xdc   :  { %144 = dma.vmem_to_hbm [thread:$0]  %s139_s0, 256, %s254_s3, [#allocation4], %s197_s27, %s197_s27, %s198_s2  }
  0xdd   :  { %193 = dma.done.wait [#allocation4], 256  }
  0xde   :  { %194 = vsyncadd [#allocation4], 4294967040 }
  0xdf   :  { %148 = vsyncpa [#allocation4], 1 }

// kernel: transformer_autoencoder_forward.53
= control target key start
LH: loop header
LB: loop body
LE: loop exit
PB: predicated region body
PF: predicated region fallthrough
CT: control target
= control target key end

     0   :  { %s1098_s12 = smov 0   ;;  %s1190_s0 = inlined_call_operand.vmem [shape: f32[2,8,32], index: 0, kind: input, shape index: {}]   ;;  %s1191_s1 = inlined_call_operand.vmem [shape: f32[2,8,64], index: 1, kind: input, shape index: {}]   ;;  %s1192_s2 = inlined_call_operand.vmem [shape: f32[2,8], index: 2, kind: input, shape index: {}]   ;;  %s1193_s3 = inlined_call_operand.vmem [shape: f32[2,8,32], index: 3, kind: output, shape index: {}]  }
   0x1 LB: > { %s943_s13 = sadd.s32 4294967295, %s1064_s12   ;;  %p947_p0 = scmp.ge.s32.totalorder %s1064_s12, 1  ;;  %s1064_s12 = sphi %s1098_s12, %s13_s12  }
   0x2   : > { %p145_p1 = scmp.lt.s32.totalorder %s1064_s12, 3 }
   0x4   : > { %p146_p2 = pnand %p947_p0, %p145_p1 }
   0x5   : > { %p171_p3 = scmp.lt.s32.totalorder (!%p146_p2), %s943_s13, 1  ;;  %s185_s24 = scalar_lea.vmem (!%p146_p2), %s1192_s2, %s943_s13 }
   0x6   : > { %149 = sbr.rel (%p146_p2) target bundleno = 1359 (0x54f), region = 32  ;;  %s1068_s25 = smov (!%p146_p2), 96  }
   0x7   : > { %s1069_s26 = smov (!%p146_p2), 120   ;;  %s1070_s27 = smov (!%p146_p2), 112  }
   0x8   : > { %s1071_s28 = smov (!%p146_p2), 104   ;;  %s1072_s29 = smov (!%p146_p2), 88  }
   0x9   : > { %s1073_s30 = smov (!%p146_p2), 72   ;;  %s1074_s4 = smov (!%p146_p2), 80  }
   0xa   : > { %s1075_s5 = smov (!%p146_p2), 8   ;;  %s1076_s6 = smov (!%p146_p2), 16  }
   0xb   : > { %v1066_v0 = vmov 0.0   ;;  %vm1067_vm0 = vmmov 0   ;;  %s172_s14 = scalar_select %p171_p3, %s943_s13, 1  ;;  %vm191_vm1 = vcmask 64512   ;;  %v1133_v4 = vld [vmem:[%s185_s24] ss:$0 sm:$0xff] }
   0xc   : > { %982 = vmatprep.subr.mxu0 %v1066_v0  ;;  %984 = vmatprep.mubr.msk.f32.mxu0 %vm1067_vm0, %v1066_v0  ;;  %s1077_s7 = smov 24   ;;  %vm871_vm2 = vcmask 130048   ;;  %vm873_vm3 = vcmask 195584   ;;  %vm875_vm4 = vcmask 261120  }
   0xd   : > { %987 = vmatprep.subr.mxu1 %v1066_v0  ;;  %989 = vmatprep.mubr.msk.f32.mxu1 %vm1067_vm0, %v1066_v0  ;;  %s1112_s15 = sshll.u32 %s172_s14, 3 }
   0xe   : > { %s178_s18 = scalar_lea.vmem %s1191_s1, %s1112_s15  ;;  %s174_s21 = scalar_lea.vmem %s1190_s0, %s1112_s15 }
   0xf   : > { %v1122_v1 = vld [vmem:[%s178_s18] sm:$0xff]  ;;  %s182_s10 = scalar_lea.vmem %s1193_s3, %s1112_s15 }
  0x10   : > { %983 = vmatpush3.xpose.msk.msra.mxu0 %vm191_vm1, %v1122_v1  ;;  %v183_v2 = vld [vmem:[%s174_s21] sm:$0xff]  ;;  %281 = vrot.lane.b32.xlu1 %v1122_v1, %s1068_s25 }
  0x11   : > { %997 = vmatprep.subr.mxu0 %v1066_v0 }
  0x13   : > { %985 = vmatmul.mubr.msk.f32.vlgmr.msra.gmra.mxu0 %vm191_vm1, %v183_v2 }
  0x14   : > { %999 = vmatprep.mubr.msk.f32.mxu0 %vm1067_vm0, %v1066_v0  ;;  %359 = vrot.lane.b32.xlu1 %v1122_v1, %s1069_s26 }
  0x18   : > { %526 = vrot.lane.b32.xlu1 %v1122_v1, %s1070_s27 }
  0x1c   : > { %524 = vrot.lane.b32.xlu1 %v183_v2, %s1070_s27 }
  0x20   : > { %693 = vrot.lane.b32.xlu1 %v1122_v1, %s1071_s28 }
  0x24   : > { %691 = vrot.lane.b32.xlu1 %v183_v2, %s1071_s28 }
  0x82   : > { %v282_v14 = vpop.permute.xlu1 %281 }
  0x83   : > { %988 = vmatpush3.msra.mxu1 %v282_v14 }
  0x84   : > { %992 = vmatprep.subr.mxu1 %v1066_v0 }
  0x86   : > { %v360_v16 = vpop.permute.xlu1 %359 }
  0x8a   : > { %v527_v17 = vpop.permute.xlu1 %526 }
  0x8e   : > { %v525_v19 = vpop.permute.xlu1 %524 }
  0x92   : > { %v694_v22 = vpop.permute.xlu1 %693 }
  0x96   : > { %v692_v23 = vpop.permute.xlu1 %691 }
  0xd3   : > { %v264_v3 = vpop.f32.mrf.mxu0 }
  0xd4   : > { %v268_v5 = vmul.f32 0.35355338, %v264_v3 }
  0xd5   : > { %v986_v6 = vpop.f32.mrf.mxu0 }
  0xd6   : > { %v269_v7 = vadd.f32 %v1133_v4, %v268_v5 }
  0xd8   : > { %v270_v8 = vsel %vm191_vm1, %v269_v7, -inf }
  0xd9   : > { %271 = vmax.xlane.f32.xlu0 %v270_v8 }
 0x162   : > { %v272_v9 = vpop.xlane.xlu0 %271 }
 0x163   : > { %v273_v10 = vsub.f32 %v269_v7, %v272_v9 }
 0x165   : > { %v274_v11 = vmul.f32 1.442695, %v273_v10 }
 0x167   : > { %1042 = vpow2.f32 %v274_v11 }
 0x174   : > { %v1043_v12 = vpop.eup %1042 }
 0x175   : > { %v276_v13 = vsel %vm191_vm1, %v1043_v12, 0.0 }
 0x176   : > { %277 = vadd.xlane.f32.xlu0 %v276_v13 }
 0x18c   : > { %357 = vrot.lane.b32.xlu0 %v183_v2, %s1069_s26 }
 0x1ff   : > { %v278_v15 = vpop.xlane.xlu0 %277 }
 0x200   : > { %1044 = vrcp.f32 %v278_v15 }
 0x203   : > { %v358_v21 = vpop.permute.xlu0 %357 }
 0x20d   : > { %v1045_v18 = vpop.eup %1044 }
 0x20e   : > { %v280_v20 = vmul.f32 %v1045_v18, %v1043_v12 }
 0x210   : > { %990 = vmatmul.mubr.msk.f32.vlgmr.msra.gmra.mxu1 %vm191_vm1, %v280_v20 }
 0x211   : > { %993 = vmatpush3.xpose.msk.msra.mxu1 %vm191_vm1, %v360_v16  ;;  %994 = vmatprep.mubr.msk.f32.mxu1 %vm1067_vm0, %v1066_v0 }
 0x212   : > { %1002 = vmatprep.subr.mxu1 %v1066_v0 }
 0x214   : > { %995 = vmatmul.mubr.msk.f32.vlgmr.msra.gmra.mxu1 %vm191_vm1, %v358_v21 }
 0x215   : > { %1003 = vmatpush3.xpose.msk.msra.mxu1 %vm191_vm1, %v527_v17  ;;  %1004 = vmatprep.mubr.msk.f32.mxu1 %vm1067_vm0, %v1066_v0 }
 0x216   : > { %1012 = vmatprep.subr.mxu1 %v1066_v0 }
 0x218   : > { %1005 = vmatmul.mubr.msk.f32.vlgmr.msra.gmra.mxu1 %vm191_vm1, %v525_v19 }
 0x219   : > { %1013 = vmatpush3.xpose.msk.msra.mxu1 %vm191_vm1, %v694_v22  ;;  %1014 = vmatprep.mubr.msk.f32.mxu1 %vm1067_vm0, %v1066_v0 }
 0x21c   : > { %1015 = vmatmul.mubr.msk.f32.vlgmr.msra.gmra.mxu1 %vm191_vm1, %v692_v23 }
 0x2d0   : > { %v1158_v24 = vpop.f32.mrf.mxu1 }
 0x2d2   : > { %v991_v25 = vpop.f32.mrf.mxu1 }
 0x2d4   : > { %v431_v26 = vpop.f32.mrf.mxu1 }
 0x2d5   : > { %v435_v27 = vmul.f32 0.35355338, %v431_v26 }
 0x2d6   : > { %v996_v28 = vpop.f32.mrf.mxu1 }
 0x2d7   : > { %v436_v29 = vadd.f32 %v1133_v4, %v435_v27 }
 0x2d8   : > { %v598_v30 = vpop.f32.mrf.mxu1 }
 0x2d9   : > { %v602_v31 = vmul.f32 0.35355338, %v598_v30  ;;  %v437_v32 = vsel %vm191_vm1, %v436_v29, -inf }
 0x2da   : > { %438 = vmax.xlane.f32.xlu1 %v437_v32  ;;  %v1006_v33 = vpop.f32.mrf.mxu1 }
 0x2db   : > { %v603_v34 = vadd.f32 %v1133_v4, %v602_v31 }
 0x2dc   : > { %v765_v35 = vpop.f32.mrf.mxu1 }
 0x2dd   : > { %v769_v36 = vmul.f32 0.35355338, %v765_v35  ;;  %v604_v37 = vsel %vm191_vm1, %v603_v34, -inf }
 0x2de   : > { %605 = vmax.xlane.f32.xlu0 %v604_v37  ;;  %v1016_v38 = vpop.f32.mrf.mxu1 }
 0x2df   : > { %v770_v39 = vadd.f32 %v1133_v4, %v769_v36 }
 0x2e1   : > { %v771_v40 = vsel %vm191_vm1, %v770_v39, -inf }
 0x2e2   : > { %772 = vmax.xlane.f32.xlu1 %v771_v40 }
 0x2f3   : > { %448 = vrot.lane.b32.xlu1 %v1122_v1, %s1072_s29 }
 0x363   : > { %v439_v41 = vpop.xlane.xlu1 %438 }
 0x364   : > { %v440_v42 = vsub.f32 %v436_v29, %v439_v41 }
 0x366   : > { %v441_v43 = vmul.f32 1.442695, %v440_v42 }
 0x367   : > { %v606_v44 = vpop.xlane.xlu0 %605 }
 0x368   : > { %1046 = vpow2.f32 %v441_v43  ;;  %v607_v45 = vsub.f32 %v603_v34, %v606_v44 }
 0x36a   : > { %v608_v46 = vmul.f32 1.442695, %v607_v45 }
 0x36b   : > { %v773_v47 = vpop.xlane.xlu1 %772 }
 0x36c   : > { %1048 = vpow2.f32 %v608_v46  ;;  %v774_v48 = vsub.f32 %v770_v39, %v773_v47 }
 0x36e   : > { %v775_v49 = vmul.f32 1.442695, %v774_v48 }
 0x36f   : > { %v449_v50 = vpop.permute.xlu1 %448 }
 0x370   : > { %1050 = vpow2.f32 %v775_v49  ;;  %998 = vmatpush3.msra.mxu0 %v449_v50 }
 0x371   : > { %1007 = vmatprep.subr.mxu0 %v1066_v0 }
 0x375   : > { %v1047_v51 = vpop.eup %1046 }
 0x376   : > { %v443_v52 = vsel %vm191_vm1, %v1047_v51, 0.0 }
 0x377   : > { %444 = vadd.xlane.f32.xlu0 %v443_v52 }
 0x379   : > { %v1049_v53 = vpop.eup %1048 }
 0x37a   : > { %v610_v54 = vsel %vm191_vm1, %v1049_v53, 0.0 }
 0x37b   : > { %611 = vadd.xlane.f32.xlu1 %v610_v54 }
 0x37d   : > { %v1051_v55 = vpop.eup %1050 }
 0x37e   : > { %v777_v56 = vsel %vm191_vm1, %v1051_v55, 0.0 }
 0x37f   : > { %778 = vadd.xlane.f32.xlu0 %v777_v56 }
 0x38c   : > { %782 = vrot.lane.b32.xlu1 %v1122_v1, %s1073_s30 }
 0x395   : > { %615 = vrot.lane.b32.xlu0 %v1122_v1, %s1074_s4 }
 0x400   : > { %v445_v57 = vpop.xlane.xlu0 %444 }
 0x401   : > { %1052 = vrcp.f32 %v445_v57 }
 0x404   : > { %v612_v58 = vpop.xlane.xlu1 %611 }
 0x405   : > { %1054 = vrcp.f32 %v612_v58 }
 0x408   : > { %v779_v59 = vpop.xlane.xlu0 %778  ;;  %v783_v2 = vpop.permute.xlu1 %782 }
 0x409   : > { %1056 = vrcp.f32 %v779_v59 }
 0x40c   : > { %v616_v61 = vpop.permute.xlu0 %615 }
 0x40e   : > { %v1053_v60 = vpop.eup %1052 }
 0x40f   : > { %v447_v62 = vmul.f32 %v1053_v60, %v1047_v51 }
 0x411   : > { %1000 = vmatmul.mubr.msk.f32.vlgmr.msra.gmra.mxu0 %vm191_vm1, %v447_v62 }
 0x412   : > { %v1055_v63 = vpop.eup %1054  ;;  %1008 = vmatpush3.msra.mxu0 %v616_v61  ;;  %1009 = vmatprep.mubr.msk.f32.mxu0 %vm1067_vm0, %v1066_v0 }
 0x413   : > { %1017 = vmatprep.subr.mxu0 %v1066_v0  ;;  %v614_v1 = vmul.f32 %v1055_v63, %v1049_v53 }
 0x415   : > { %1010 = vmatmul.mubr.msk.f32.vlgmr.msra.gmra.mxu0 %vm191_vm1, %v614_v1 }
 0x416   : > { %v1057_v3 = vpop.eup %1056  ;;  %1018 = vmatpush3.msra.mxu0 %v783_v2  ;;  %1019 = vmatprep.mubr.msk.f32.mxu0 %vm1067_vm0, %v1066_v0 }
 0x417   : > { %v781_v4 = vmul.f32 %v1057_v3, %v1051_v55 }
 0x419   : > { %1020 = vmatmul.mubr.msk.f32.vlgmr.msra.gmra.mxu0 %vm191_vm1, %v781_v4 }
 0x4d1   : > { %v520_v5 = vpop.f32.mrf.mxu0 }
 0x4d2   : > { %859 = vrot.lane.b32.xlu1 %v520_v5, %s1075_s5 }
 0x4d3   : > { %v1001_v6 = vpop.f32.mrf.mxu0 }
 0x4d5   : > { %v687_v7 = vpop.f32.mrf.mxu0 }
 0x4d6   : > { %863 = vrot.lane.b32.xlu0 %v687_v7, %s1076_s6 }
 0x4d7   : > { %v1011_v8 = vpop.f32.mrf.mxu0 }
 0x4d9   : > { %v854_v9 = vpop.f32.mrf.mxu0 }
 0x4da   : > { %867 = vrot.lane.b32.xlu1 %v854_v9, %s1077_s7 }
 0x4db   : > { %v1021_v10 = vpop.f32.mrf.mxu0 }
 0x544   : > { %v860_v11 = vpop.permute.xlu1 %859 }
 0x545   : > { %v870_v0 = vsel %vm191_vm1, %v1158_v24, %v860_v11 }
 0x548   : > { %v864_v12 = vpop.permute.xlu0 %863 }
 0x549   : > { %v872_v13 = vsel %vm871_vm2, %v870_v0, %v864_v12 }
 0x54c   : > { %v868_v14 = vpop.permute.xlu1 %867 }
 0x54d   : > { %v874_v15 = vsel %vm873_vm3, %v872_v13, %v868_v14 }
 0x54e   : > { %876 = vst.msk [vmem:[%s182_s10] sm:$0xff] %vm875_vm4, %v874_v15 }
 0x54f PF: > { %s13_s12 = sadd.s32 1, %s1064_s12  }
 0x550   : > { %p10_p4 = scmp.ge.s32.totalorder %s13_s12, 4  }
 0x552   :  { %12 = sbr.rel (!%p10_p4) target bundleno = 1 (0x1), region = 66 }

</bundles_post_ra>
